<compile_context>
chip_gen: v6e
topology: v6e:2x2x1
jax: 0.10.0
libtpu: 0.0.40
codegen_flags: <defaults>
</compile_context>

<pallas_src>
import functools
import math

import jax
import jax.numpy as jnp
from jax.experimental import pallas as pl
from jax.experimental.pallas import tpu as pltpu


def _vmem_spec():
    return pl.BlockSpec(memory_space=pltpu.MemorySpace.VMEM)


def _r8(n):
    return -(-n // 8) * 8


def _slab_layout(d_model, L, H):
    """Row offsets (all 8-aligned), total rows and lane-dense column count of
    the single packed parameter slab."""
    WF = 4 * L * H
    cols = max(WF, (1 + L) * H, d_model, H)
    cols = -(-cols // 128) * 128
    sections = [
        ("nff_w", (1 + L) * d_model),   # narrow_segment_decoder_ff weight^T
        ("nff_b", 1),
        ("nl_w", d_model),              # narrow_linear weight^T
        ("nl_b", 1),
        ("rec_w", H),                   # recover_linear weight^T
        ("rec_b", 1),
        ("wih0", H),                    # layer-0 W_ih, gate-major padded to WF
        ("whh", L * H),                 # wavefront block [[Whh0|Wih1],[0|Whh1]]
        ("bias", 1),                    # all layers' b_ih+b_hh, gate-major
    ]
    off, cur = {}, 0
    for name, rows in sections:
        off[name] = cur
        cur += _r8(rows)
    return off, cur, cols


# ----------------------------------------------------------------------------
# Fused kernel: narrow_ff + narrow_linear + wavefront LSTM + recover_linear.
# ----------------------------------------------------------------------------
def _fused_kernel(ssh_ref, se_ref, slab_ref, o_ref, xw_ref, oseq_ref, *,
                  T, BP, L, H, d_model, off):
    f32 = jnp.float32
    T1 = T + 1
    LH = L * H
    WF = 4 * LH
    NFF_IN = (1 + L) * d_model
    NFF_OUT = (1 + L) * H

    def load_slab(name, nrows, ncols):
        # full-width, 8-aligned row load; column slice happens on the value
        return slab_ref[off[name]:off[name] + nrows, :][:, 0:ncols]

    nff_w = load_slab("nff_w", NFF_IN, NFF_OUT)
    nff_b = load_slab("nff_b", 1, NFF_OUT)
    nl_w = load_slab("nl_w", d_model, H)
    nl_b = load_slab("nl_b", 1, H)
    rec_w = load_slab("rec_w", H, d_model)
    rec_b = load_slab("rec_b", 1, d_model)
    wih0 = load_slab("wih0", H, WF)
    whh = load_slab("whh", LH, WF)
    bias = load_slab("bias", 1, WF)

    # narrow_segment_decoder_ff / narrow_linear (batch rows padded to BP=8)
    ssh_n = jnp.dot(ssh_ref[...], nff_w, preferred_element_type=f32) + nff_b
    se_n = jnp.dot(se_ref[...], nl_w, preferred_element_type=f32) + nl_b

    # Hoisted layer-0 input->gate matmul over the whole sequence, gate-major
    # columns, all layers' biases folded in.  Off the serial chain; stores are
    # 8-row aligned, 256-lane wide.
    xw_ref[0:BP, :] = (
        jnp.dot(ssh_n[:, 0:H], wih0, preferred_element_type=f32) + bias)
    xw_ref[BP:T1 * BP, :] = (
        jnp.dot(se_n, wih0, preferred_element_type=f32) + bias)

    # Concatenated per-layer states: h_all = [h_0 | h_1 | ...], c_all likewise.
    # h_l init = tanh(decoder_h_init[l]), c = 0   (module semantics).
    h_all = jnp.tanh(ssh_n[:, H:(1 + L) * H])       # (BP, L*H)
    c_all = jnp.zeros((BP, LH), f32)

    def splice(old, new, a, b):
        if a == 0 and b == LH:
            return new
        parts = []
        if a > 0:
            parts.append(old[:, :a])
        parts.append(new)
        if b < LH:
            parts.append(old[:, b:])
        return jnp.concatenate(parts, axis=-1)

    # Layer-wavefront recurrence (statically unrolled): wall step s updates
    # every active layer l (l <= s <= l+T) for its time step s - l, all from
    # the start-of-step states, in ONE (BP, L*H) x (L*H, 4*L*H) block matmul.
    for s in range(T1 + L - 1):
        pre = xw_ref[s * BP:(s + 1) * BP, :] if s < T1 else bias
        gates = pre + jnp.dot(h_all, whh, preferred_element_type=f32)
        sig = jax.nn.sigmoid(gates)             # one EUP region for i,f,o,g
        lo, hi = max(0, s - T), min(L, s + 1)   # active layers (static range)
        a, b = lo * H, hi * H
        i_g = sig[:, 0 * LH + a:0 * LH + b]
        f_g = sig[:, 1 * LH + a:1 * LH + b]
        o_g = sig[:, 2 * LH + a:2 * LH + b]
        g_g = 2.0 * sig[:, 3 * LH + a:3 * LH + b] - 1.0  # tanh(x)=2*sig(2x)-1
        c_upd = f_g * c_all[:, a:b] + i_g * g_g
        h_upd = o_g * jnp.tanh(c_upd)
        c_all = splice(c_all, c_upd, a, b)
        h_all = splice(h_all, h_upd, a, b)
        if s >= L - 1:                           # top layer emitted time s-L+1
            t_out = s - (L - 1)
            oseq_ref[t_out * BP:(t_out + 1) * BP, :] = h_all[:, (L - 1) * H:LH]
        # TODO(synk): inter-layer LSTM dropout is identity in eval mode.

    # recover_linear over the whole padded output sequence: one matmul.
    out = jnp.dot(oseq_ref[...], rec_w, preferred_element_type=f32) + rec_b
    o_ref[...] = out.astype(o_ref.dtype)


# ----------------------------------------------------------------------------
# Forward pass wrapper (single pallas_call).
# ----------------------------------------------------------------------------
def segment_decoder_lstm_forward(params, seg_start_hidden, seg_embeds, *,
                                 dec_n_layers, dim_narrow):
    T, B, d_model = seg_embeds.shape
    L, H = dec_n_layers, dim_narrow
    T1 = T + 1
    BP = _r8(B)                     # pad batch to a full sublane group
    off, _, _ = _slab_layout(d_model, L, H)

    ssh = seg_start_hidden.reshape(B, (1 + L) * d_model).astype(jnp.float32)
    ssh_p = jnp.pad(ssh, ((0, BP - B), (0, 0)))
    se_p = jnp.pad(seg_embeds.astype(jnp.float32),
                   ((0, 0), (0, BP - B), (0, 0))).reshape(T * BP, d_model)

    kernel = functools.partial(_fused_kernel, T=T, BP=BP, L=L, H=H,
                               d_model=d_model, off=off)
    # TODO(synk): if many independent segments are decoded, batch them behind a
    # leading "parallel" grid axis (uses both v7x TensorCores and amortizes
    # launch/DMA cost); a single segment stays gridless.  For very large
    # d_model configs the narrow_ff weight must be tiled instead of loaded
    # whole (v7x VMEM is 64 MiB).
    out_p = pl.pallas_call(
        kernel,
        out_shape=jax.ShapeDtypeStruct((T1 * BP, d_model), seg_embeds.dtype),
        in_specs=[_vmem_spec()] * 3,
        out_specs=_vmem_spec(),
        scratch_shapes=[
            pltpu.VMEM((T1 * BP, 4 * L * H), jnp.float32),   # hoisted xw
            pltpu.VMEM((T1 * BP, H), jnp.float32),           # top-layer outputs
        ],
    )(ssh_p, se_p, params["slab"])
    # nn.Dropout is identity in eval mode; drop the batch padding rows.
    return out_p.reshape(T1, BP, d_model)[:, :B, :]


# ----------------------------------------------------------------------------
# Parameter construction.  `raw` keeps PyTorch layouts (used by the pure-JAX
# reference); `prepped` is the single kernel-layout slab built ONCE at init.
# ----------------------------------------------------------------------------
def prep_params(raw, d_model, dec_n_layers, dim_narrow):
    """Pack all weights into ONE lane-dense f32 slab in kernel layout: linear
    weights pre-transposed to (in, out); LSTM weights rebuilt as the wavefront
    block matrices in gate-major [i|f|o|g] column order across layers, with
    the g-gate columns (and biases) pre-scaled by 2 for the sigmoid trick."""
    L, H = dec_n_layers, dim_narrow
    WF = 4 * L * H
    off, rows, cols = _slab_layout(d_model, L, H)
    f32 = jnp.float32

    def local_w(w):   # (4H, in) torch order [i,f,g,o] -> (in, 4H) [i,f,o,2g]
        i, f, g, o = jnp.split(w.astype(f32), 4, axis=0)
        return jnp.concatenate([i, f, o, 2.0 * g], axis=0).T

    def local_b(b):
        i, f, g, o = jnp.split(b.astype(f32), 4)
        return jnp.concatenate([i, f, o, 2.0 * g]).reshape(1, -1)

    def place(local, l):   # scatter layer-l gate blocks into gate-major cols
        out = jnp.zeros((local.shape[0], WF), f32)
        for G in range(4):
            out = out.at[:, G * L * H + l * H:G * L * H + (l + 1) * H].set(
                local[:, G * H:(G + 1) * H])
        return out

    wih0 = place(local_w(raw["lstm_w_ih"][0]), 0)            # (H, WF)
    whh = jnp.zeros((L * H, WF), f32)                         # block-bidiagonal
    for r in range(L):
        blk = place(local_w(raw["lstm_w_hh"][r]), r)
        if r + 1 < L:
            blk = blk + place(local_w(raw["lstm_w_ih"][r + 1]), r + 1)
        whh = whh.at[r * H:(r + 1) * H, :].set(blk)
    bias = jnp.zeros((1, WF), f32)
    for l in range(L):
        bl = local_b(raw["lstm_b_ih"][l] + raw["lstm_b_hh"][l])
        for G in range(4):
            bias = bias.at[:, G * L * H + l * H:G * L * H + (l + 1) * H].set(
                bl[:, G * H:(G + 1) * H])

    slab = jnp.zeros((rows, cols), f32)

    def put(s, name, mat):
        r, c = mat.shape
        return s.at[off[name]:off[name] + r, 0:c].set(mat.astype(f32))

    slab = put(slab, "nff_w", raw["narrow_ff_w"].T)
    slab = put(slab, "nff_b", raw["narrow_ff_b"].reshape(1, -1))
    slab = put(slab, "nl_w", raw["narrow_linear_w"].T)
    slab = put(slab, "nl_b", raw["narrow_linear_b"].reshape(1, -1))
    slab = put(slab, "rec_w", raw["recover_w"].T)
    slab = put(slab, "rec_b", raw["recover_b"].reshape(1, -1))
    slab = put(slab, "wih0", wih0)
    slab = put(slab, "whh", whh)
    slab = put(slab, "bias", bias)
    return {"slab": slab}


def init_params(key, d_model, dec_n_layers, dim_narrow):
    def uniform(k, shape, fan_in):
        bound = 1.0 / math.sqrt(fan_in)
        return jax.random.uniform(k, shape, jnp.float32, -bound, bound)

    keys = jax.random.split(key, 7)
    big_in = (1 + dec_n_layers) * d_model
    big_out = (1 + dec_n_layers) * dim_narrow
    H = dim_narrow

    raw = {
        "narrow_linear_w": uniform(keys[0], (H, d_model), d_model),
        "narrow_linear_b": uniform(keys[1], (H,), d_model),
        "narrow_ff_w": uniform(keys[2], (big_out, big_in), big_in),
        "narrow_ff_b": uniform(keys[3], (big_out,), big_in),
        "recover_w": uniform(keys[4], (d_model, H), H),
        "recover_b": uniform(keys[5], (d_model,), H),
    }
    kk = jax.random.split(keys[6], 4 * dec_n_layers)
    w_ih, w_hh, b_ih, b_hh = [], [], [], []
    for l in range(dec_n_layers):
        w_ih.append(uniform(kk[4 * l + 0], (4 * H, H), H))   # layer input == H
        w_hh.append(uniform(kk[4 * l + 1], (4 * H, H), H))
        b_ih.append(uniform(kk[4 * l + 2], (4 * H,), H))
        b_hh.append(uniform(kk[4 * l + 3], (4 * H,), H))
    raw["lstm_w_ih"] = jnp.stack(w_ih)   # (L, 4H, H), PyTorch gate order
    raw["lstm_w_hh"] = jnp.stack(w_hh)
    raw["lstm_b_ih"] = jnp.stack(b_ih)
    raw["lstm_b_hh"] = jnp.stack(b_hh)

    return raw, prep_params(raw, d_model, dec_n_layers, dim_narrow)


# ----------------------------------------------------------------------------
# Pure-JAX reference (PyTorch semantics, torch-layout weights) for validation.
# ----------------------------------------------------------------------------
def reference_forward(raw, seg_start_hidden, seg_embeds, dec_n_layers):
    hi = jax.lax.Precision.HIGHEST

    def linear(x, w, b):
        return jnp.matmul(x, w.T, precision=hi) + b

    ssh = linear(seg_start_hidden, raw["narrow_ff_w"], raw["narrow_ff_b"])
    se = linear(seg_embeds, raw["narrow_linear_w"], raw["narrow_linear_b"])
    H = se.shape[-1]
    B = se.shape[1]
    start_symbol = ssh[:, :, :H]
    h_init = jnp.tanh(
        ssh[0, :, H:].reshape(B, dec_n_layers, H).transpose(1, 0, 2))
    x = jnp.concatenate([start_symbol, se], axis=0)      # (1+T, B, H)
    for l in range(dec_n_layers):
        w_ih, w_hh = raw["lstm_w_ih"][l], raw["lstm_w_hh"][l]
        b = raw["lstm_b_ih"][l] + raw["lstm_b_hh"][l]
        h = h_init[l]
        c = jnp.zeros_like(h)
        outs = []
        for t in range(x.shape[0]):
            gates = (jnp.matmul(x[t], w_ih.T, precision=hi)
                     + jnp.matmul(h, w_hh.T, precision=hi) + b)
            i, f, g, o = jnp.split(gates, 4, axis=-1)
            c = jax.nn.sigmoid(f) * c + jax.nn.sigmoid(i) * jnp.tanh(g)
            h = jax.nn.sigmoid(o) * jnp.tanh(c)
            outs.append(h)
        x = jnp.stack(outs, axis=0)
    return linear(x, raw["recover_w"], raw["recover_b"])


if __name__ == "__main__":
    d_model = 32
    dec_n_layers = 2
    dim_narrow = d_model          # module default: dim_narrow = d_model (truthy)
    B = 4
    max_seg_len = 8

    key = jax.random.PRNGKey(0)
    k_param, k_hid, k_emb = jax.random.split(key, 3)

    raw, params = init_params(k_param, d_model, dec_n_layers, dim_narrow)
    seg_start_hidden = jax.random.normal(
        k_hid, (1, B, (1 + dec_n_layers) * d_model), jnp.float32)
    seg_embeds = jax.random.normal(k_emb, (max_seg_len, B, d_model), jnp.float32)

    fwd = jax.jit(segment_decoder_lstm_forward,
                  static_argnames=("dec_n_layers", "dim_narrow"))
    out = jax.block_until_ready(
        fwd(params, seg_start_hidden, seg_embeds,
            dec_n_layers=dec_n_layers, dim_narrow=dim_narrow))

    assert out.shape == (1 + max_seg_len, B, d_model), out.shape
    assert bool(jnp.all(jnp.isfinite(out)))

    # Validate the fused / wavefront / gate-reordered kernel against the
    # PyTorch-semantics reference (tolerance allows for MXU precision).
    ref = reference_forward(raw, seg_start_hidden, seg_embeds, dec_n_layers)
    err = float(jnp.max(jnp.abs(out - ref)))
    assert err < 2e-2, f"max abs error vs reference = {err}"

    print("KERNEL_OK")
</pallas_src>

<mosaic_0001>
module attributes {stable_mosaic.version = 11 : i64} {
  func.func @_fused_kernel(%arg0: memref<8x96xf32, #tpu.memory_space<vmem>>, %arg1: memref<64x32xf32, #tpu.memory_space<vmem>>, %arg2: memref<288x256xf32, #tpu.memory_space<vmem>>, %arg3: memref<72x32xf32, #tpu.memory_space<vmem>>, %arg4: memref<72x256xf32, #tpu.memory_space<vmem>>, %arg5: memref<72x32xf32, #tpu.memory_space<vmem>>) attributes {dimension_semantics = [], scalar_prefetch = 0 : i64, scratch_operands = 2 : i64, tpu.core_type = #tpu.core_type<tc>} {
    %c0 = arith.constant 0 : index
    %c0_0 = arith.constant 0 : index
    %0 = vector.load %arg2[%c0, %c0_0] : memref<288x256xf32, #tpu.memory_space<vmem>>, vector<96x256xf32>
    %1 = vector.extract_strided_slice %0 {offsets = [0, 0], sizes = [96, 96], strides = [1, 1]} : vector<96x256xf32> to vector<96x96xf32>
    %c96 = arith.constant 96 : index
    %c0_1 = arith.constant 0 : index
    %2 = vector.load %arg2[%c96, %c0_1] : memref<288x256xf32, #tpu.memory_space<vmem>>, vector<1x256xf32>
    %3 = vector.extract_strided_slice %2 {offsets = [0, 0], sizes = [1, 96], strides = [1, 1]} : vector<1x256xf32> to vector<1x96xf32>
    %c104 = arith.constant 104 : index
    %c0_2 = arith.constant 0 : index
    %4 = vector.load %arg2[%c104, %c0_2] : memref<288x256xf32, #tpu.memory_space<vmem>>, vector<32x256xf32>
    %5 = vector.extract_strided_slice %4 {offsets = [0, 0], sizes = [32, 32], strides = [1, 1]} : vector<32x256xf32> to vector<32x32xf32>
    %c136 = arith.constant 136 : index
    %c0_3 = arith.constant 0 : index
    %6 = vector.load %arg2[%c136, %c0_3] : memref<288x256xf32, #tpu.memory_space<vmem>>, vector<1x256xf32>
    %7 = vector.extract_strided_slice %6 {offsets = [0, 0], sizes = [1, 32], strides = [1, 1]} : vector<1x256xf32> to vector<1x32xf32>
    %c144 = arith.constant 144 : index
    %c0_4 = arith.constant 0 : index
    %8 = vector.load %arg2[%c144, %c0_4] : memref<288x256xf32, #tpu.memory_space<vmem>>, vector<32x256xf32>
    %9 = vector.extract_strided_slice %8 {offsets = [0, 0], sizes = [32, 32], strides = [1, 1]} : vector<32x256xf32> to vector<32x32xf32>
    %c176 = arith.constant 176 : index
    %c0_5 = arith.constant 0 : index
    %10 = vector.load %arg2[%c176, %c0_5] : memref<288x256xf32, #tpu.memory_space<vmem>>, vector<1x256xf32>
    %11 = vector.extract_strided_slice %10 {offsets = [0, 0], sizes = [1, 32], strides = [1, 1]} : vector<1x256xf32> to vector<1x32xf32>
    %c184 = arith.constant 184 : index
    %c0_6 = arith.constant 0 : index
    %12 = vector.load %arg2[%c184, %c0_6] : memref<288x256xf32, #tpu.memory_space<vmem>>, vector<32x256xf32>
    %c216 = arith.constant 216 : index
    %c0_7 = arith.constant 0 : index
    %13 = vector.load %arg2[%c216, %c0_7] : memref<288x256xf32, #tpu.memory_space<vmem>>, vector<64x256xf32>
    %c280 = arith.constant 280 : index
    %c0_8 = arith.constant 0 : index
    %14 = vector.load %arg2[%c280, %c0_8] : memref<288x256xf32, #tpu.memory_space<vmem>>, vector<1x256xf32>
    %c0_9 = arith.constant 0 : index
    %c0_10 = arith.constant 0 : index
    %15 = vector.load %arg0[%c0_9, %c0_10] : memref<8x96xf32, #tpu.memory_space<vmem>>, vector<8x96xf32>
    %cst = arith.constant dense<0.000000e+00> : vector<8x96xf32>
    %16 = tpu.matmul %15, %1, %cst {dimension_numbers = #tpu.dot_dimension_numbers<[1], [0], [0], [1], [0, 0, 1, 1], [], []>} : vector<8x96xf32>, vector<96x96xf32>, vector<8x96xf32> -> vector<8x96xf32>
    %17 = vector.broadcast %3 : vector<1x96xf32> to vector<8x96xf32>
    %18 = arith.addf %16, %17 : vector<8x96xf32>
    %c0_11 = arith.constant 0 : index
    %c0_12 = arith.constant 0 : index
    %19 = vector.load %arg1[%c0_11, %c0_12] : memref<64x32xf32, #tpu.memory_space<vmem>>, vector<64x32xf32>
    %cst_13 = arith.constant dense<0.000000e+00> : vector<64x32xf32>
    %20 = tpu.matmul %19, %5, %cst_13 {dimension_numbers = #tpu.dot_dimension_numbers<[1], [0], [0], [1], [0, 0, 1, 1], [], []>} : vector<64x32xf32>, vector<32x32xf32>, vector<64x32xf32> -> vector<64x32xf32>
    %21 = vector.broadcast %7 : vector<1x32xf32> to vector<64x32xf32>
    %22 = arith.addf %20, %21 : vector<64x32xf32>
    %23 = vector.extract_strided_slice %18 {offsets = [0, 0], sizes = [8, 32], strides = [1, 1]} : vector<8x96xf32> to vector<8x32xf32>
    %cst_14 = arith.constant dense<0.000000e+00> : vector<8x256xf32>
    %24 = tpu.matmul %23, %12, %cst_14 {dimension_numbers = #tpu.dot_dimension_numbers<[1], [0], [0], [1], [0, 0, 1, 1], [], []>} : vector<8x32xf32>, vector<32x256xf32>, vector<8x256xf32> -> vector<8x256xf32>
    %25 = vector.broadcast %14 : vector<1x256xf32> to vector<8x256xf32>
    %26 = arith.addf %24, %25 : vector<8x256xf32>
    %c0_15 = arith.constant 0 : index
    %c0_16 = arith.constant 0 : index
    %27 = vector.load %arg4[%c0_15, %c0_16] : memref<72x256xf32, #tpu.memory_space<vmem>>, vector<8x256xf32>
    tpu.vector_store %arg4[%c0_15, %c0_16], %26 {strides = array<i32>} : memref<72x256xf32, #tpu.memory_space<vmem>>, vector<8x256xf32>,
    %cst_17 = arith.constant dense<0.000000e+00> : vector<64x256xf32>
    %28 = tpu.matmul %22, %12, %cst_17 {dimension_numbers = #tpu.dot_dimension_numbers<[1], [0], [0], [1], [0, 0, 1, 1], [], []>} : vector<64x32xf32>, vector<32x256xf32>, vector<64x256xf32> -> vector<64x256xf32>
    %29 = vector.broadcast %14 : vector<1x256xf32> to vector<64x256xf32>
    %30 = arith.addf %28, %29 : vector<64x256xf32>
    %c8 = arith.constant 8 : index
    %c0_18 = arith.constant 0 : index
    %31 = vector.load %arg4[%c8, %c0_18] : memref<72x256xf32, #tpu.memory_space<vmem>>, vector<64x256xf32>
    tpu.vector_store %arg4[%c8, %c0_18], %30 {strides = array<i32>} : memref<72x256xf32, #tpu.memory_space<vmem>>, vector<64x256xf32>,
    %32 = vector.extract_strided_slice %18 {offsets = [0, 32], sizes = [8, 64], strides = [1, 1]} : vector<8x96xf32> to vector<8x64xf32>
    %33 = math.tanh %32 : vector<8x64xf32>
    %cst_19 = arith.constant 0.000000e+00 : f32
    %34 = vector.broadcast %cst_19 : f32 to vector<8x64xf32>
    %c0_20 = arith.constant 0 : index
    %c0_21 = arith.constant 0 : index
    %35 = vector.load %arg4[%c0_20, %c0_21] : memref<72x256xf32, #tpu.memory_space<vmem>>, vector<8x256xf32>
    %cst_22 = arith.constant dense<0.000000e+00> : vector<8x256xf32>
    %36 = tpu.matmul %33, %13, %cst_22 {dimension_numbers = #tpu.dot_dimension_numbers<[1], [0], [0], [1], [0, 0, 1, 1], [], []>} : vector<8x64xf32>, vector<64x256xf32>, vector<8x256xf32> -> vector<8x256xf32>
    %37 = arith.addf %35, %36 : vector<8x256xf32>
    %38 = arith.negf %37 : vector<8x256xf32>
    %39 = math.exp %38 : vector<8x256xf32>
    %cst_23 = arith.constant 1.000000e+00 : f32
    %40 = vector.broadcast %cst_23 : f32 to vector<8x256xf32>
    %41 = arith.addf %40, %39 : vector<8x256xf32>
    %42 = arith.divf %40, %41 : vector<8x256xf32>
    %43 = vector.extract_strided_slice %42 {offsets = [0, 0], sizes = [8, 32], strides = [1, 1]} : vector<8x256xf32> to vector<8x32xf32>
    %44 = vector.extract_strided_slice %42 {offsets = [0, 64], sizes = [8, 32], strides = [1, 1]} : vector<8x256xf32> to vector<8x32xf32>
    %45 = vector.extract_strided_slice %42 {offsets = [0, 128], sizes = [8, 32], strides = [1, 1]} : vector<8x256xf32> to vector<8x32xf32>
    %46 = vector.extract_strided_slice %42 {offsets = [0, 192], sizes = [8, 32], strides = [1, 1]} : vector<8x256xf32> to vector<8x32xf32>
    %cst_24 = arith.constant 2.000000e+00 : f32
    %47 = vector.broadcast %cst_24 : f32 to vector<8x32xf32>
    %48 = arith.mulf %47, %46 : vector<8x32xf32>
    %cst_25 = arith.constant 1.000000e+00 : f32
    %49 = vector.broadcast %cst_25 : f32 to vector<8x32xf32>
    %50 = arith.subf %48, %49 : vector<8x32xf32>
    %51 = vector.extract_strided_slice %34 {offsets = [0, 0], sizes = [8, 32], strides = [1, 1]} : vector<8x64xf32> to vector<8x32xf32>
    %52 = arith.mulf %44, %51 : vector<8x32xf32>
    %53 = arith.mulf %43, %50 : vector<8x32xf32>
    %54 = arith.addf %52, %53 : vector<8x32xf32>
    %55 = math.tanh %54 : vector<8x32xf32>
    %56 = arith.mulf %45, %55 : vector<8x32xf32>
    %57 = vector.extract_strided_slice %34 {offsets = [0, 32], sizes = [8, 32], strides = [1, 1]} : vector<8x64xf32> to vector<8x32xf32>
    %58 = tpu.concatenate %54, %57 in 1 : vector<8x32xf32>, vector<8x32xf32> -> vector<8x64xf32>
    %59 = vector.extract_strided_slice %33 {offsets = [0, 32], sizes = [8, 32], strides = [1, 1]} : vector<8x64xf32> to vector<8x32xf32>
    %60 = tpu.concatenate %56, %59 in 1 : vector<8x32xf32>, vector<8x32xf32> -> vector<8x64xf32>
    %c8_26 = arith.constant 8 : index
    %c0_27 = arith.constant 0 : index
    %61 = vector.load %arg4[%c8_26, %c0_27] : memref<72x256xf32, #tpu.memory_space<vmem>>, vector<8x256xf32>
    %cst_28 = arith.constant dense<0.000000e+00> : vector<8x256xf32>
    %62 = tpu.matmul %60, %13, %cst_28 {dimension_numbers = #tpu.dot_dimension_numbers<[1], [0], [0], [1], [0, 0, 1, 1], [], []>} : vector<8x64xf32>, vector<64x256xf32>, vector<8x256xf32> -> vector<8x256xf32>
    %63 = arith.addf %61, %62 : vector<8x256xf32>
    %64 = arith.negf %63 : vector<8x256xf32>
    %65 = math.exp %64 : vector<8x256xf32>
    %cst_29 = arith.constant 1.000000e+00 : f32
    %66 = vector.broadcast %cst_29 : f32 to vector<8x256xf32>
    %67 = arith.addf %66, %65 : vector<8x256xf32>
    %68 = arith.divf %66, %67 : vector<8x256xf32>
    %69 = vector.extract_strided_slice %68 {offsets = [0, 0], sizes = [8, 64], strides = [1, 1]} : vector<8x256xf32> to vector<8x64xf32>
    %70 = vector.extract_strided_slice %68 {offsets = [0, 64], sizes = [8, 64], strides = [1, 1]} : vector<8x256xf32> to vector<8x64xf32>
    %71 = vector.extract_strided_slice %68 {offsets = [0, 128], sizes = [8, 64], strides = [1, 1]} : vector<8x256xf32> to vector<8x64xf32>
    %72 = vector.extract_strided_slice %68 {offsets = [0, 192], sizes = [8, 64], strides = [1, 1]} : vector<8x256xf32> to vector<8x64xf32>
    %cst_30 = arith.constant 2.000000e+00 : f32
    %73 = vector.broadcast %cst_30 : f32 to vector<8x64xf32>
    %74 = arith.mulf %73, %72 : vector<8x64xf32>
    %cst_31 = arith.constant 1.000000e+00 : f32
    %75 = vector.broadcast %cst_31 : f32 to vector<8x64xf32>
    %76 = arith.subf %74, %75 : vector<8x64xf32>
    %77 = arith.mulf %70, %58 : vector<8x64xf32>
    %78 = arith.mulf %69, %76 : vector<8x64xf32>
    %79 = arith.addf %77, %78 : vector<8x64xf32>
    %80 = math.tanh %79 : vector<8x64xf32>
    %81 = arith.mulf %71, %80 : vector<8x64xf32>
    %82 = vector.extract_strided_slice %81 {offsets = [0, 32], sizes = [8, 32], strides = [1, 1]} : vector<8x64xf32> to vector<8x32xf32>
    %c0_32 = arith.constant 0 : index
    %c0_33 = arith.constant 0 : index
    %83 = vector.load %arg5[%c0_32, %c0_33] : memref<72x32xf32, #tpu.memory_space<vmem>>, vector<8x32xf32>
    tpu.vector_store %arg5[%c0_32, %c0_33], %82 {strides = array<i32>} : memref<72x32xf32, #tpu.memory_space<vmem>>, vector<8x32xf32>,
    %c16 = arith.constant 16 : index
    %c0_34 = arith.constant 0 : index
    %84 = vector.load %arg4[%c16, %c0_34] : memref<72x256xf32, #tpu.memory_space<vmem>>, vector<8x256xf32>
    %cst_35 = arith.constant dense<0.000000e+00> : vector<8x256xf32>
    %85 = tpu.matmul %81, %13, %cst_35 {dimension_numbers = #tpu.dot_dimension_numbers<[1], [0], [0], [1], [0, 0, 1, 1], [], []>} : vector<8x64xf32>, vector<64x256xf32>, vector<8x256xf32> -> vector<8x256xf32>
    %86 = arith.addf %84, %85 : vector<8x256xf32>
    %87 = arith.negf %86 : vector<8x256xf32>
    %88 = math.exp %87 : vector<8x256xf32>
    %cst_36 = arith.constant 1.000000e+00 : f32
    %89 = vector.broadcast %cst_36 : f32 to vector<8x256xf32>
    %90 = arith.addf %89, %88 : vector<8x256xf32>
    %91 = arith.divf %89, %90 : vector<8x256xf32>
    %92 = vector.extract_strided_slice %91 {offsets = [0, 0], sizes = [8, 64], strides = [1, 1]} : vector<8x256xf32> to vector<8x64xf32>
    %93 = vector.extract_strided_slice %91 {offsets = [0, 64], sizes = [8, 64], strides = [1, 1]} : vector<8x256xf32> to vector<8x64xf32>
    %94 = vector.extract_strided_slice %91 {offsets = [0, 128], sizes = [8, 64], strides = [1, 1]} : vector<8x256xf32> to vector<8x64xf32>
    %95 = vector.extract_strided_slice %91 {offsets = [0, 192], sizes = [8, 64], strides = [1, 1]} : vector<8x256xf32> to vector<8x64xf32>
    %cst_37 = arith.constant 2.000000e+00 : f32
    %96 = vector.broadcast %cst_37 : f32 to vector<8x64xf32>
    %97 = arith.mulf %96, %95 : vector<8x64xf32>
    %cst_38 = arith.constant 1.000000e+00 : f32
    %98 = vector.broadcast %cst_38 : f32 to vector<8x64xf32>
    %99 = arith.subf %97, %98 : vector<8x64xf32>
    %100 = arith.mulf %93, %79 : vector<8x64xf32>
    %101 = arith.mulf %92, %99 : vector<8x64xf32>
    %102 = arith.addf %100, %101 : vector<8x64xf32>
    %103 = math.tanh %102 : vector<8x64xf32>
    %104 = arith.mulf %94, %103 : vector<8x64xf32>
    %105 = vector.extract_strided_slice %104 {offsets = [0, 32], sizes = [8, 32], strides = [1, 1]} : vector<8x64xf32> to vector<8x32xf32>
    %c8_39 = arith.constant 8 : index
    %c0_40 = arith.constant 0 : index
    %106 = vector.load %arg5[%c8_39, %c0_40] : memref<72x32xf32, #tpu.memory_space<vmem>>, vector<8x32xf32>
    tpu.vector_store %arg5[%c8_39, %c0_40], %105 {strides = array<i32>} : memref<72x32xf32, #tpu.memory_space<vmem>>, vector<8x32xf32>,
    %c24 = arith.constant 24 : index
    %c0_41 = arith.constant 0 : index
    %107 = vector.load %arg4[%c24, %c0_41] : memref<72x256xf32, #tpu.memory_space<vmem>>, vector<8x256xf32>
    %cst_42 = arith.constant dense<0.000000e+00> : vector<8x256xf32>
    %108 = tpu.matmul %104, %13, %cst_42 {dimension_numbers = #tpu.dot_dimension_numbers<[1], [0], [0], [1], [0, 0, 1, 1], [], []>} : vector<8x64xf32>, vector<64x256xf32>, vector<8x256xf32> -> vector<8x256xf32>
    %109 = arith.addf %107, %108 : vector<8x256xf32>
    %110 = arith.negf %109 : vector<8x256xf32>
    %111 = math.exp %110 : vector<8x256xf32>
    %cst_43 = arith.constant 1.000000e+00 : f32
    %112 = vector.broadcast %cst_43 : f32 to vector<8x256xf32>
    %113 = arith.addf %112, %111 : vector<8x256xf32>
    %114 = arith.divf %112, %113 : vector<8x256xf32>
    %115 = vector.extract_strided_slice %114 {offsets = [0, 0], sizes = [8, 64], strides = [1, 1]} : vector<8x256xf32> to vector<8x64xf32>
    %116 = vector.extract_strided_slice %114 {offsets = [0, 64], sizes = [8, 64], strides = [1, 1]} : vector<8x256xf32> to vector<8x64xf32>
    %117 = vector.extract_strided_slice %114 {offsets = [0, 128], sizes = [8, 64], strides = [1, 1]} : vector<8x256xf32> to vector<8x64xf32>
    %118 = vector.extract_strided_slice %114 {offsets = [0, 192], sizes = [8, 64], strides = [1, 1]} : vector<8x256xf32> to vector<8x64xf32>
    %cst_44 = arith.constant 2.000000e+00 : f32
    %119 = vector.broadcast %cst_44 : f32 to vector<8x64xf32>
    %120 = arith.mulf %119, %118 : vector<8x64xf32>
    %cst_45 = arith.constant 1.000000e+00 : f32
    %121 = vector.broadcast %cst_45 : f32 to vector<8x64xf32>
    %122 = arith.subf %120, %121 : vector<8x64xf32>
    %123 = arith.mulf %116, %102 : vector<8x64xf32>
    %124 = arith.mulf %115, %122 : vector<8x64xf32>
    %125 = arith.addf %123, %124 : vector<8x64xf32>
    %126 = math.tanh %125 : vector<8x64xf32>
    %127 = arith.mulf %117, %126 : vector<8x64xf32>
    %128 = vector.extract_strided_slice %127 {offsets = [0, 32], sizes = [8, 32], strides = [1, 1]} : vector<8x64xf32> to vector<8x32xf32>
    %c16_46 = arith.constant 16 : index
    %c0_47 = arith.constant 0 : index
    %129 = vector.load %arg5[%c16_46, %c0_47] : memref<72x32xf32, #tpu.memory_space<vmem>>, vector<8x32xf32>
    tpu.vector_store %arg5[%c16_46, %c0_47], %128 {strides = array<i32>} : memref<72x32xf32, #tpu.memory_space<vmem>>, vector<8x32xf32>,
    %c32 = arith.constant 32 : index
    %c0_48 = arith.constant 0 : index
    %130 = vector.load %arg4[%c32, %c0_48] : memref<72x256xf32, #tpu.memory_space<vmem>>, vector<8x256xf32>
    %cst_49 = arith.constant dense<0.000000e+00> : vector<8x256xf32>
    %131 = tpu.matmul %127, %13, %cst_49 {dimension_numbers = #tpu.dot_dimension_numbers<[1], [0], [0], [1], [0, 0, 1, 1], [], []>} : vector<8x64xf32>, vector<64x256xf32>, vector<8x256xf32> -> vector<8x256xf32>
    %132 = arith.addf %130, %131 : vector<8x256xf32>
    %133 = arith.negf %132 : vector<8x256xf32>
    %134 = math.exp %133 : vector<8x256xf32>
    %cst_50 = arith.constant 1.000000e+00 : f32
    %135 = vector.broadcast %cst_50 : f32 to vector<8x256xf32>
    %136 = arith.addf %135, %134 : vector<8x256xf32>
    %137 = arith.divf %135, %136 : vector<8x256xf32>
    %138 = vector.extract_strided_slice %137 {offsets = [0, 0], sizes = [8, 64], strides = [1, 1]} : vector<8x256xf32> to vector<8x64xf32>
    %139 = vector.extract_strided_slice %137 {offsets = [0, 64], sizes = [8, 64], strides = [1, 1]} : vector<8x256xf32> to vector<8x64xf32>
    %140 = vector.extract_strided_slice %137 {offsets = [0, 128], sizes = [8, 64], strides = [1, 1]} : vector<8x256xf32> to vector<8x64xf32>
    %141 = vector.extract_strided_slice %137 {offsets = [0, 192], sizes = [8, 64], strides = [1, 1]} : vector<8x256xf32> to vector<8x64xf32>
    %cst_51 = arith.constant 2.000000e+00 : f32
    %142 = vector.broadcast %cst_51 : f32 to vector<8x64xf32>
    %143 = arith.mulf %142, %141 : vector<8x64xf32>
    %cst_52 = arith.constant 1.000000e+00 : f32
    %144 = vector.broadcast %cst_52 : f32 to vector<8x64xf32>
    %145 = arith.subf %143, %144 : vector<8x64xf32>
    %146 = arith.mulf %139, %125 : vector<8x64xf32>
    %147 = arith.mulf %138, %145 : vector<8x64xf32>
    %148 = arith.addf %146, %147 : vector<8x64xf32>
    %149 = math.tanh %148 : vector<8x64xf32>
    %150 = arith.mulf %140, %149 : vector<8x64xf32>
    %151 = vector.extract_strided_slice %150 {offsets = [0, 32], sizes = [8, 32], strides = [1, 1]} : vector<8x64xf32> to vector<8x32xf32>
    %c24_53 = arith.constant 24 : index
    %c0_54 = arith.constant 0 : index
    %152 = vector.load %arg5[%c24_53, %c0_54] : memref<72x32xf32, #tpu.memory_space<vmem>>, vector<8x32xf32>
    tpu.vector_store %arg5[%c24_53, %c0_54], %151 {strides = array<i32>} : memref<72x32xf32, #tpu.memory_space<vmem>>, vector<8x32xf32>,
    %c40 = arith.constant 40 : index
    %c0_55 = arith.constant 0 : index
    %153 = vector.load %arg4[%c40, %c0_55] : memref<72x256xf32, #tpu.memory_space<vmem>>, vector<8x256xf32>
    %cst_56 = arith.constant dense<0.000000e+00> : vector<8x256xf32>
    %154 = tpu.matmul %150, %13, %cst_56 {dimension_numbers = #tpu.dot_dimension_numbers<[1], [0], [0], [1], [0, 0, 1, 1], [], []>} : vector<8x64xf32>, vector<64x256xf32>, vector<8x256xf32> -> vector<8x256xf32>
    %155 = arith.addf %153, %154 : vector<8x256xf32>
    %156 = arith.negf %155 : vector<8x256xf32>
    %157 = math.exp %156 : vector<8x256xf32>
    %cst_57 = arith.constant 1.000000e+00 : f32
    %158 = vector.broadcast %cst_57 : f32 to vector<8x256xf32>
    %159 = arith.addf %158, %157 : vector<8x256xf32>
    %160 = arith.divf %158, %159 : vector<8x256xf32>
    %161 = vector.extract_strided_slice %160 {offsets = [0, 0], sizes = [8, 64], strides = [1, 1]} : vector<8x256xf32> to vector<8x64xf32>
    %162 = vector.extract_strided_slice %160 {offsets = [0, 64], sizes = [8, 64], strides = [1, 1]} : vector<8x256xf32> to vector<8x64xf32>
    %163 = vector.extract_strided_slice %160 {offsets = [0, 128], sizes = [8, 64], strides = [1, 1]} : vector<8x256xf32> to vector<8x64xf32>
    %164 = vector.extract_strided_slice %160 {offsets = [0, 192], sizes = [8, 64], strides = [1, 1]} : vector<8x256xf32> to vector<8x64xf32>
    %cst_58 = arith.constant 2.000000e+00 : f32
    %165 = vector.broadcast %cst_58 : f32 to vector<8x64xf32>
    %166 = arith.mulf %165, %164 : vector<8x64xf32>
    %cst_59 = arith.constant 1.000000e+00 : f32
    %167 = vector.broadcast %cst_59 : f32 to vector<8x64xf32>
    %168 = arith.subf %166, %167 : vector<8x64xf32>
    %169 = arith.mulf %162, %148 : vector<8x64xf32>
    %170 = arith.mulf %161, %168 : vector<8x64xf32>
    %171 = arith.addf %169, %170 : vector<8x64xf32>
    %172 = math.tanh %171 : vector<8x64xf32>
    %173 = arith.mulf %163, %172 : vector<8x64xf32>
    %174 = vector.extract_strided_slice %173 {offsets = [0, 32], sizes = [8, 32], strides = [1, 1]} : vector<8x64xf32> to vector<8x32xf32>
    %c32_60 = arith.constant 32 : index
    %c0_61 = arith.constant 0 : index
    %175 = vector.load %arg5[%c32_60, %c0_61] : memref<72x32xf32, #tpu.memory_space<vmem>>, vector<8x32xf32>
    tpu.vector_store %arg5[%c32_60, %c0_61], %174 {strides = array<i32>} : memref<72x32xf32, #tpu.memory_space<vmem>>, vector<8x32xf32>,
    %c48 = arith.constant 48 : index
    %c0_62 = arith.constant 0 : index
    %176 = vector.load %arg4[%c48, %c0_62] : memref<72x256xf32, #tpu.memory_space<vmem>>, vector<8x256xf32>
    %cst_63 = arith.constant dense<0.000000e+00> : vector<8x256xf32>
    %177 = tpu.matmul %173, %13, %cst_63 {dimension_numbers = #tpu.dot_dimension_numbers<[1], [0], [0], [1], [0, 0, 1, 1], [], []>} : vector<8x64xf32>, vector<64x256xf32>, vector<8x256xf32> -> vector<8x256xf32>
    %178 = arith.addf %176, %177 : vector<8x256xf32>
    %179 = arith.negf %178 : vector<8x256xf32>
    %180 = math.exp %179 : vector<8x256xf32>
    %cst_64 = arith.constant 1.000000e+00 : f32
    %181 = vector.broadcast %cst_64 : f32 to vector<8x256xf32>
    %182 = arith.addf %181, %180 : vector<8x256xf32>
    %183 = arith.divf %181, %182 : vector<8x256xf32>
    %184 = vector.extract_strided_slice %183 {offsets = [0, 0], sizes = [8, 64], strides = [1, 1]} : vector<8x256xf32> to vector<8x64xf32>
    %185 = vector.extract_strided_slice %183 {offsets = [0, 64], sizes = [8, 64], strides = [1, 1]} : vector<8x256xf32> to vector<8x64xf32>
    %186 = vector.extract_strided_slice %183 {offsets = [0, 128], sizes = [8, 64], strides = [1, 1]} : vector<8x256xf32> to vector<8x64xf32>
    %187 = vector.extract_strided_slice %183 {offsets = [0, 192], sizes = [8, 64], strides = [1, 1]} : vector<8x256xf32> to vector<8x64xf32>
    %cst_65 = arith.constant 2.000000e+00 : f32
    %188 = vector.broadcast %cst_65 : f32 to vector<8x64xf32>
    %189 = arith.mulf %188, %187 : vector<8x64xf32>
    %cst_66 = arith.constant 1.000000e+00 : f32
    %190 = vector.broadcast %cst_66 : f32 to vector<8x64xf32>
    %191 = arith.subf %189, %190 : vector<8x64xf32>
    %192 = arith.mulf %185, %171 : vector<8x64xf32>
    %193 = arith.mulf %184, %191 : vector<8x64xf32>
    %194 = arith.addf %192, %193 : vector<8x64xf32>
    %195 = math.tanh %194 : vector<8x64xf32>
    %196 = arith.mulf %186, %195 : vector<8x64xf32>
    %197 = vector.extract_strided_slice %196 {offsets = [0, 32], sizes = [8, 32], strides = [1, 1]} : vector<8x64xf32> to vector<8x32xf32>
    %c40_67 = arith.constant 40 : index
    %c0_68 = arith.constant 0 : index
    %198 = vector.load %arg5[%c40_67, %c0_68] : memref<72x32xf32, #tpu.memory_space<vmem>>, vector<8x32xf32>
    tpu.vector_store %arg5[%c40_67, %c0_68], %197 {strides = array<i32>} : memref<72x32xf32, #tpu.memory_space<vmem>>, vector<8x32xf32>,
    %c56 = arith.constant 56 : index
    %c0_69 = arith.constant 0 : index
    %199 = vector.load %arg4[%c56, %c0_69] : memref<72x256xf32, #tpu.memory_space<vmem>>, vector<8x256xf32>
    %cst_70 = arith.constant dense<0.000000e+00> : vector<8x256xf32>
    %200 = tpu.matmul %196, %13, %cst_70 {dimension_numbers = #tpu.dot_dimension_numbers<[1], [0], [0], [1], [0, 0, 1, 1], [], []>} : vector<8x64xf32>, vector<64x256xf32>, vector<8x256xf32> -> vector<8x256xf32>
    %201 = arith.addf %199, %200 : vector<8x256xf32>
    %202 = arith.negf %201 : vector<8x256xf32>
    %203 = math.exp %202 : vector<8x256xf32>
    %cst_71 = arith.constant 1.000000e+00 : f32
    %204 = vector.broadcast %cst_71 : f32 to vector<8x256xf32>
    %205 = arith.addf %204, %203 : vector<8x256xf32>
    %206 = arith.divf %204, %205 : vector<8x256xf32>
    %207 = vector.extract_strided_slice %206 {offsets = [0, 0], sizes = [8, 64], strides = [1, 1]} : vector<8x256xf32> to vector<8x64xf32>
    %208 = vector.extract_strided_slice %206 {offsets = [0, 64], sizes = [8, 64], strides = [1, 1]} : vector<8x256xf32> to vector<8x64xf32>
    %209 = vector.extract_strided_slice %206 {offsets = [0, 128], sizes = [8, 64], strides = [1, 1]} : vector<8x256xf32> to vector<8x64xf32>
    %210 = vector.extract_strided_slice %206 {offsets = [0, 192], sizes = [8, 64], strides = [1, 1]} : vector<8x256xf32> to vector<8x64xf32>
    %cst_72 = arith.constant 2.000000e+00 : f32
    %211 = vector.broadcast %cst_72 : f32 to vector<8x64xf32>
    %212 = arith.mulf %211, %210 : vector<8x64xf32>
    %cst_73 = arith.constant 1.000000e+00 : f32
    %213 = vector.broadcast %cst_73 : f32 to vector<8x64xf32>
    %214 = arith.subf %212, %213 : vector<8x64xf32>
    %215 = arith.mulf %208, %194 : vector<8x64xf32>
    %216 = arith.mulf %207, %214 : vector<8x64xf32>
    %217 = arith.addf %215, %216 : vector<8x64xf32>
    %218 = math.tanh %217 : vector<8x64xf32>
    %219 = arith.mulf %209, %218 : vector<8x64xf32>
    %220 = vector.extract_strided_slice %219 {offsets = [0, 32], sizes = [8, 32], strides = [1, 1]} : vector<8x64xf32> to vector<8x32xf32>
    %c48_74 = arith.constant 48 : index
    %c0_75 = arith.constant 0 : index
    %221 = vector.load %arg5[%c48_74, %c0_75] : memref<72x32xf32, #tpu.memory_space<vmem>>, vector<8x32xf32>
    tpu.vector_store %arg5[%c48_74, %c0_75], %220 {strides = array<i32>} : memref<72x32xf32, #tpu.memory_space<vmem>>, vector<8x32xf32>,
    %c64 = arith.constant 64 : index
    %c0_76 = arith.constant 0 : index
    %222 = vector.load %arg4[%c64, %c0_76] : memref<72x256xf32, #tpu.memory_space<vmem>>, vector<8x256xf32>
    %cst_77 = arith.constant dense<0.000000e+00> : vector<8x256xf32>
    %223 = tpu.matmul %219, %13, %cst_77 {dimension_numbers = #tpu.dot_dimension_numbers<[1], [0], [0], [1], [0, 0, 1, 1], [], []>} : vector<8x64xf32>, vector<64x256xf32>, vector<8x256xf32> -> vector<8x256xf32>
    %224 = arith.addf %222, %223 : vector<8x256xf32>
    %225 = arith.negf %224 : vector<8x256xf32>
    %226 = math.exp %225 : vector<8x256xf32>
    %cst_78 = arith.constant 1.000000e+00 : f32
    %227 = vector.broadcast %cst_78 : f32 to vector<8x256xf32>
    %228 = arith.addf %227, %226 : vector<8x256xf32>
    %229 = arith.divf %227, %228 : vector<8x256xf32>
    %230 = vector.extract_strided_slice %229 {offsets = [0, 0], sizes = [8, 64], strides = [1, 1]} : vector<8x256xf32> to vector<8x64xf32>
    %231 = vector.extract_strided_slice %229 {offsets = [0, 64], sizes = [8, 64], strides = [1, 1]} : vector<8x256xf32> to vector<8x64xf32>
    %232 = vector.extract_strided_slice %229 {offsets = [0, 128], sizes = [8, 64], strides = [1, 1]} : vector<8x256xf32> to vector<8x64xf32>
    %233 = vector.extract_strided_slice %229 {offsets = [0, 192], sizes = [8, 64], strides = [1, 1]} : vector<8x256xf32> to vector<8x64xf32>
    %cst_79 = arith.constant 2.000000e+00 : f32
    %234 = vector.broadcast %cst_79 : f32 to vector<8x64xf32>
    %235 = arith.mulf %234, %233 : vector<8x64xf32>
    %cst_80 = arith.constant 1.000000e+00 : f32
    %236 = vector.broadcast %cst_80 : f32 to vector<8x64xf32>
    %237 = arith.subf %235, %236 : vector<8x64xf32>
    %238 = arith.mulf %231, %217 : vector<8x64xf32>
    %239 = arith.mulf %230, %237 : vector<8x64xf32>
    %240 = arith.addf %238, %239 : vector<8x64xf32>
    %241 = math.tanh %240 : vector<8x64xf32>
    %242 = arith.mulf %232, %241 : vector<8x64xf32>
    %243 = vector.extract_strided_slice %242 {offsets = [0, 32], sizes = [8, 32], strides = [1, 1]} : vector<8x64xf32> to vector<8x32xf32>
    %c56_81 = arith.constant 56 : index
    %c0_82 = arith.constant 0 : index
    %244 = vector.load %arg5[%c56_81, %c0_82] : memref<72x32xf32, #tpu.memory_space<vmem>>, vector<8x32xf32>
    tpu.vector_store %arg5[%c56_81, %c0_82], %243 {strides = array<i32>} : memref<72x32xf32, #tpu.memory_space<vmem>>, vector<8x32xf32>,
    %cst_83 = arith.constant dense<0.000000e+00> : vector<8x256xf32>
    %245 = tpu.matmul %242, %13, %cst_83 {dimension_numbers = #tpu.dot_dimension_numbers<[1], [0], [0], [1], [0, 0, 1, 1], [], []>} : vector<8x64xf32>, vector<64x256xf32>, vector<8x256xf32> -> vector<8x256xf32>
    %246 = vector.broadcast %14 : vector<1x256xf32> to vector<8x256xf32>
    %247 = arith.addf %246, %245 : vector<8x256xf32>
    %248 = arith.negf %247 : vector<8x256xf32>
    %249 = math.exp %248 : vector<8x256xf32>
    %cst_84 = arith.constant 1.000000e+00 : f32
    %250 = vector.broadcast %cst_84 : f32 to vector<8x256xf32>
    %251 = arith.addf %250, %249 : vector<8x256xf32>
    %252 = arith.divf %250, %251 : vector<8x256xf32>
    %253 = vector.extract_strided_slice %252 {offsets = [0, 32], sizes = [8, 32], strides = [1, 1]} : vector<8x256xf32> to vector<8x32xf32>
    %254 = vector.extract_strided_slice %252 {offsets = [0, 96], sizes = [8, 32], strides = [1, 1]} : vector<8x256xf32> to vector<8x32xf32>
    %255 = vector.extract_strided_slice %252 {offsets = [0, 160], sizes = [8, 32], strides = [1, 1]} : vector<8x256xf32> to vector<8x32xf32>
    %256 = vector.extract_strided_slice %252 {offsets = [0, 224], sizes = [8, 32], strides = [1, 1]} : vector<8x256xf32> to vector<8x32xf32>
    %cst_85 = arith.constant 2.000000e+00 : f32
    %257 = vector.broadcast %cst_85 : f32 to vector<8x32xf32>
    %258 = arith.mulf %257, %256 : vector<8x32xf32>
    %cst_86 = arith.constant 1.000000e+00 : f32
    %259 = vector.broadcast %cst_86 : f32 to vector<8x32xf32>
    %260 = arith.subf %258, %259 : vector<8x32xf32>
    %261 = vector.extract_strided_slice %240 {offsets = [0, 32], sizes = [8, 32], strides = [1, 1]} : vector<8x64xf32> to vector<8x32xf32>
    %262 = arith.mulf %254, %261 : vector<8x32xf32>
    %263 = arith.mulf %253, %260 : vector<8x32xf32>
    %264 = arith.addf %262, %263 : vector<8x32xf32>
    %265 = math.tanh %264 : vector<8x32xf32>
    %266 = arith.mulf %255, %265 : vector<8x32xf32>
    %267 = vector.extract_strided_slice %242 {offsets = [0, 0], sizes = [8, 32], strides = [1, 1]} : vector<8x64xf32> to vector<8x32xf32>
    %268 = tpu.concatenate %267, %266 in 1 : vector<8x32xf32>, vector<8x32xf32> -> vector<8x64xf32>
    %269 = vector.extract_strided_slice %268 {offsets = [0, 32], sizes = [8, 32], strides = [1, 1]} : vector<8x64xf32> to vector<8x32xf32>
    %c64_87 = arith.constant 64 : index
    %c0_88 = arith.constant 0 : index
    %270 = vector.load %arg5[%c64_87, %c0_88] : memref<72x32xf32, #tpu.memory_space<vmem>>, vector<8x32xf32>
    tpu.vector_store %arg5[%c64_87, %c0_88], %269 {strides = array<i32>} : memref<72x32xf32, #tpu.memory_space<vmem>>, vector<8x32xf32>,
    %c0_89 = arith.constant 0 : index
    %c0_90 = arith.constant 0 : index
    %271 = vector.load %arg5[%c0_89, %c0_90] : memref<72x32xf32, #tpu.memory_space<vmem>>, vector<72x32xf32>
    %cst_91 = arith.constant dense<0.000000e+00> : vector<72x32xf32>
    %272 = tpu.matmul %271, %9, %cst_91 {dimension_numbers = #tpu.dot_dimension_numbers<[1], [0], [0], [1], [0, 0, 1, 1], [], []>} : vector<72x32xf32>, vector<32x32xf32>, vector<72x32xf32> -> vector<72x32xf32>
    %273 = vector.broadcast %11 : vector<1x32xf32> to vector<72x32xf32>
    %274 = arith.addf %272, %273 : vector<72x32xf32>
    %c0_92 = arith.constant 0 : index
    %c0_93 = arith.constant 0 : index
    %275 = vector.load %arg3[%c0_92, %c0_93] : memref<72x32xf32, #tpu.memory_space<vmem>>, vector<72x32xf32>
    tpu.vector_store %arg3[%c0_92, %c0_93], %274 {strides = array<i32>} : memref<72x32xf32, #tpu.memory_space<vmem>>, vector<72x32xf32>,
    return
  }
}

</mosaic_0001>

<bundles_post_ra>
// kernel: segment_decoder_lstm_forward.1
= control target key start
LH: loop header
LB: loop body
LE: loop exit
PB: predicated region body
PF: predicated region fallthrough
CT: control target
= control target key end

     0   :  { %8 = vsyncpa [#allocation5], 0  ;;  %s2178_s12 = smov [#allocation4]   ;;  %s2754_s0 = inlined_call_operand.vmem [shape: f32[8,96], index: 0, kind: input, shape index: {}]   ;;  %s2755_s1 = inlined_call_operand.vmem [shape: f32[64,32], index: 1, kind: input, shape index: {}]   ;;  %s2756_s2 = inlined_call_operand.hbm [shape: f32[288,256], index: 2, kind: input, shape index: {}]   ;;  %s2757_s3 = inlined_call_operand.vmem [shape: f32[72,32], index: 3, kind: output, shape index: {}]  }
   0x1   :  { %s18_s13 = sshll.u32 %s2178_s12, 4  ;;  %s19_s13 = int_to_ptr.vmem [resolvable:$true] %s18_s13 }
   0x2   :  { %s2164_s14 = scalar_lea.vmem %s19_s13, 9216  ;;  %p2169_p1 = scmp.lt.s32.totalorder %s19_s13, %s19_s13 }
   0x3   :  { %p2165_p0 = scmp.ne.s32.totalorder %s19_s13, %s2164_s14  ;;  %p2170_p2 = scmp.lt.s32.totalorder %s2164_s14, %s2164_s14 }
   0x5   :  { %p2171_p3 = por %p2170_p2, %p2169_p1 }
   0x7   :  { %p2172_p4 = pnand %p2171_p3, %p2165_p0 }
   0x9   :  { %2175 = shalt.err (!%p2172_p4)
}
   0xa   :  { %s2179_s15 = smov 256   ;;  %s2180_s16 = smov 16  }
   0xb   :  { %24 = dma.hbm_to_vmem [thread:$0]  %s2756_s2, 9216, %s19_s13, [#allocation5], %s2179_s15, %s2179_s15, %s2180_s16  }
   0xc   :  { %2176 = dma.done.wait [#allocation5], 9216  }
   0xd   :  { %2177 = vsyncadd [#allocation5], 4294958080  ;;  %v2181_v0 = vmov 0.0   ;;  %vm2182_vm0 = vmmov 0   ;;  %v39_v1 = vld [vmem:[#allocation4 + $0xb0] sm:$0xff]  ;;  %v38_v2 = vld [vmem:[#allocation4 + $0xa0] sm:$0xff]  ;;  %v82_v35 = vlaneseq }
   0xe   :  { %1957 = vmatprep.subr.mxu0 %v2181_v0  ;;  %1981 = vmatprep.mubr.msk.f32.mxu0 %vm2182_vm0, %v2181_v0  ;;  %v37_v3 = vld [vmem:[#allocation4 + $0x90] sm:$0xff]  ;;  %v36_v4 = vld [vmem:[#allocation4 + $0x80] sm:$0xff]  ;;  %v161_v12 = vld [vmem:[%s2755_s1] sm:$0xff]  ;;  %vm175_vm1 = vcmask 261120   ;;  %vm87_vm2 = vcmask 785408   ;;  %vm551_vm3 = vcmask 523264  }
   0xf   :  { %1958 = vmatpush3.msra.mxu0 %v39_v1  ;;  %v45_v5 = vld [vmem:[#allocation4 + $0x100] sm:$0xff]  ;;  %v44_v6 = vld [vmem:[#allocation4 + $0xf0] sm:$0xff]  ;;  %v163_v15 = vld [vmem:[%s2755_s1 + $0x10] sm:$0xff]  ;;  %1992 = vmatprep.mubr.msk.f32.mxu1 %vm175_vm1, %v161_v12  ;;  %v2290_v36 = vshrl.u32 %v82_v35, 7 }
  0x10   :  { %1959 = vmatprep.subr.mxu0 %v2181_v0  ;;  %1984 = vmatprep.subr.mxu1 %v45_v5  ;;  %v35_v7 = vld [vmem:[#allocation4 + $0x70] sm:$0xff]  ;;  %v43_v8 = vld [vmem:[#allocation4 + $0xe0] sm:$0xff]  ;;  %v61_v16 = vld [vmem:[#allocation4 + $0x1a8] sm:$0xff] }
  0x11   :  { %1960 = vmatpush3.msra.mxu0 %v38_v2  ;;  %1985 = vmatpush3.msra.mxu1 %v45_v5  ;;  %v34_v9 = vld [vmem:[#allocation4 + $0x60] sm:$0xff]  ;;  %v42_v10 = vld [vmem:[#allocation4 + $0xd0] sm:$0xff]  ;;  %v165_v21 = vld [vmem:[%s2755_s1 + $0x20] sm:$0xff]  ;;  %v2293_v38 = vsub.s32 0, %v2290_v36 }
  0x12   :  { %1961 = vmatprep.subr.mxu0 %v2181_v0  ;;  %1986 = vmatprep.subr.mxu1 %v44_v6  ;;  %v33_v11 = vld [vmem:[#allocation4 + $0x50] sm:$0xff]  ;;  %v162_v13 = vld [vmem:[%s2755_s1 + $0x8] sm:$0xff]  ;;  %v2240_v22 = vld [vmem:[#allocation4 + $0x198] sm:$0xff] }
  0x13   :  { %1962 = vmatpush3.msra.mxu0 %v37_v3  ;;  %1987 = vmatpush3.msra.mxu1 %v44_v6  ;;  %v32_v14 = vld [vmem:[#allocation4 + $0x40] sm:$0xff]  ;;  %v31_v17 = vld [vmem:[#allocation4 + $0x30] sm:$0xff]  ;;  %v167_v27 = vld [vmem:[%s2755_s1 + $0x30] sm:$0xff] }
  0x14   :  { %1963 = vmatprep.subr.mxu0 %v2181_v0  ;;  %1988 = vmatprep.subr.mxu1 %v43_v8  ;;  %v2229_v18 = vld [vmem:[#allocation4 + $0x1a0] sm:$0xff]  ;;  %v164_v19 = vld [vmem:[%s2755_s1 + $0x18] sm:$0xff]  ;;  %v80_v28 = vld [vmem:[%s2754_s0] sm:$0xff]  ;;  %s2183_s0 = smov 96  }
  0x15   :  { %1964 = vmatpush3.msra.mxu0 %v36_v4  ;;  %1989 = vmatpush3.msra.mxu1 %v43_v8  ;;  %v30_v20 = vld [vmem:[#allocation4 + $0x20] sm:$0xff]  ;;  %v29_v23 = vld [vmem:[#allocation4 + $0x10] sm:$0xff]  ;;  %v2259_v29 = vld [vmem:[#allocation4 + $0x188] sm:$0xff] }
  0x16   :  { %1965 = vmatprep.subr.mxu0 %v2181_v0  ;;  %1990 = vmatprep.subr.mxu1 %v42_v10  ;;  %v2244_v24 = vld [vmem:[#allocation4 + $0x190] sm:$0xff]  ;;  %v166_v25 = vld [vmem:[%s2755_s1 + $0x28] sm:$0xff]  ;;  %v2278_v32 = vld [vmem:[#allocation4 + $0x178] sm:$0xff] }
  0x17   :  { %1966 = vmatpush3.msra.mxu0 %v35_v7  ;;  %1991 = vmatpush3.msra.mxu1 %v42_v10  ;;  %v28_v26 = vld [vmem:[#allocation4] sm:$0xff]  ;;  %v168_v30 = vld [vmem:[%s2755_s1 + $0x38] sm:$0xff]  ;;  %v2287_v34 = vld [vmem:[#allocation4 + $0x228] sm:$0xff]  ;;  %s2184_s1 = smov 64  }
  0x18   :  { %1967 = vmatprep.subr.mxu0 %v2181_v0  ;;  %1993 = vmatmul.mubr.msk.f32.vlgmr.msra.gmra.mxu1 %vm175_vm1, %v162_v13  ;;  %v2275_v31 = vld [vmem:[#allocation4 + $0x180] sm:$0xff]  ;;  %v2282_v33 = vld [vmem:[#allocation4 + $0x170] sm:$0xff]  ;;  %v2304_v48 = vld [vmem:[#allocation4 + $0x218] sm:$0xff] }
  0x19   :  { %1968 = vmatpush3.msra.mxu0 %v34_v9  ;;  %1995 = vmatprep.mubr.msk.f32.mxu1 %vm175_vm1, %v163_v15  ;;  %v47_v37 = vld [vmem:[#allocation4 + $0x110] ss:$8 sm:$0x3]  ;;  %v41_v43 = vld [vmem:[#allocation4 + $0xc0] ss:$8 sm:$0x3] }
  0x1a   :  { %1969 = vmatprep.subr.mxu0 %v2181_v0  ;;  %343 = vmatprep.subr.mxu1 %v61_v16  ;;  %v2296_v39 = vrot.slane %v47_v37, %v2293_v38  ;;  %v2301_v46 = vld [vmem:[#allocation4 + $0x220] sm:$0xff]  ;;  %v85_v49 = vrot.slane %v41_v43, %v2293_v38  ;;  %v2308_v50 = vld [vmem:[#allocation4 + $0x210] sm:$0xff]  ;;  %v2311_v51 = vld [vmem:[#allocation4 + $0x208] sm:$0xff] }
  0x1b   :  { %1970 = vmatpush3.msra.mxu0 %v33_v11  ;;  %344 = vmatpush1.msra.mxu1 %v2229_v18  ;;  %v2316_v53 = vld [vmem:[#allocation4 + $0x200] sm:$0xff]  ;;  %v2320_v56 = vld [vmem:[#allocation4 + $0x1f8] sm:$0xff]  ;;  %v2323_v58 = vld [vmem:[#allocation4 + $0x1f0] sm:$0xff] }
  0x1c   :  { %1971 = vmatprep.subr.mxu0 %v2181_v0  ;;  %1996 = vmatmul.mubr.msk.f32.gmra.mxu1 %vm175_vm1, %v164_v19  ;;  %v2334_v62 = vld [vmem:[#allocation4 + $0x1e8] sm:$0xff]  ;;  %v2341_v1 = vld [vmem:[#allocation4 + $0x1e0] sm:$0xff]  ;;  %v2344_v3 = vld [vmem:[#allocation4 + $0x1d8] sm:$0xff] }
  0x1d   :  { %1972 = vmatpush3.msra.mxu0 %v32_v14  ;;  %1998 = vmatprep.mubr.msk.f32.mxu1 %vm175_vm1, %v165_v21  ;;  %v2348_v4 = vld [vmem:[#allocation4 + $0x1d0] sm:$0xff]  ;;  %v2358_v7 = vld [vmem:[#allocation4 + $0x1c8] sm:$0xff]  ;;  %v2361_v8 = vld [vmem:[#allocation4 + $0x1c0] sm:$0xff] }
  0x1e   :  { %1973 = vmatprep.subr.mxu0 %v2181_v0  ;;  %345 = vmatprep.subr.mxu1 %v2240_v22  ;;  %v2373_v11 = vld [vmem:[#allocation4 + $0x1b8] sm:$0xff]  ;;  %v2382_v13 = vld [vmem:[#allocation4 + $0x1b0] sm:$0xff] }
  0x1f   :  { %1974 = vmatpush3.msra.mxu0 %v31_v17  ;;  %346 = vmatpush1.msra.mxu1 %v2244_v24 }
  0x20   :  { %1975 = vmatprep.subr.mxu0 %v2181_v0  ;;  %1999 = vmatmul.mubr.msk.f32.gmra.mxu1 %vm175_vm1, %v166_v25 }
  0x21   :  { %1976 = vmatpush3.msra.mxu0 %v30_v20  ;;  %2001 = vmatprep.mubr.msk.f32.mxu1 %vm175_vm1, %v167_v27 }
  0x22   :  { %1977 = vmatprep.subr.mxu0 %v2181_v0  ;;  %347 = vmatprep.subr.mxu1 %v2259_v29 }
  0x23   :  { %1978 = vmatpush3.msra.mxu0 %v29_v23  ;;  %348 = vmatpush1.msra.mxu1 %v2275_v31  ;;  %v79_v23 = vld [vmem:[#allocation4 + $0x230] ss:$8 sm:$0x3] }
  0x24   :  { %1979 = vmatprep.subr.mxu0 %v2181_v0  ;;  %2002 = vmatmul.mubr.msk.f32.gmra.mxu1 %vm175_vm1, %v168_v30 }
  0x25   :  { %1980 = vmatpush3.msra.mxu0 %v28_v26  ;;  %383 = vmatprep.mubr.f32.mxu1 %v2181_v0  ;;  %v2433_v26 = vrot.slane %v79_v23, %v2293_v38 }
  0x26   :  { %1982 = vmatmul.mubr.msk.f32.vlgmr.msra.gmra.mxu0 %vm87_vm2, %v80_v28  ;;  %440 = vmatprep.subr.mxu0 %v61_v16 }
  0x27   :  { %480 = vmatprep.mubr.f32.mxu0 %v2181_v0  ;;  %441 = vmatpush1.msra.mxu0 %v2229_v18 }
  0x28   :  { %442 = vmatprep.subr.mxu0 %v2240_v22  ;;  %349 = vmatprep.subr.mxu1 %v2278_v32 }
  0x29   :  { %443 = vmatpush1.msra.mxu0 %v2244_v24  ;;  %350 = vmatpush1.msra.mxu1 %v2282_v33 }
  0x2a   :  { %444 = vmatprep.subr.mxu0 %v2259_v29  ;;  %2039 = vmatprep.subr.mxu1 %v61_v16 }
  0x2b   :  { %445 = vmatpush1.msra.mxu0 %v2275_v31 }
  0x2c   :  { %446 = vmatprep.subr.mxu0 %v2278_v32 }
  0x2d   :  { %447 = vmatpush1.msra.mxu0 %v2282_v33 }
  0x2e   :  { %803 = vmatprep.subr.mxu0 %v2287_v34 }
  0xd8   :  { %v1994_v40 = vpop.f32.mrf.mxu1 }
  0xd9   :  { %v272_v45 = vadd.f32 %v1994_v40, %v2296_v39 }
  0xda   :  { %v266_v41 = vpop.f32.mrf.mxu1 }
  0xdb   :  { %v267_v42 = vadd.f32 %v266_v41, %v2296_v39 }
  0xdc   :  { %v1997_v44 = vpop.f32.mrf.mxu1 }
  0xdd   :  { %1862 = vmatmul.mubr.msk.f32.vlgmr.msra.gmra.mxu0 %vm175_vm1, %v267_v42  ;;  %v282_v60 = vadd.f32 %v1997_v44, %v2296_v39 }
  0xde   :  { %486 = vmatprep.mubr.f32.mxu0 %v2181_v0  ;;  %v276_v47 = vpop.f32.mrf.mxu1  ;;  %804 = vmatpush1.msra.mxu0 %v2301_v46 }
  0xdf   :  { %805 = vmatprep.subr.mxu0 %v2304_v48  ;;  %v277_v52 = vadd.f32 %v276_v47, %v2296_v39 }
  0xe0   :  { %806 = vmatpush1.msra.mxu0 %v2308_v50  ;;  %v2000_v55 = vpop.f32.mrf.mxu1 }
  0xe1   :  { %1863 = vmatmul.mubr.msk.f32.gmra.mxu0 %vm175_vm1, %v272_v45  ;;  %807 = vmatprep.subr.mxu0 %v2311_v51  ;;  %v292_v5 = vadd.f32 %v2000_v55, %v2296_v39 }
  0xe2   :  { %492 = vmatprep.mubr.f32.mxu0 %v2181_v0  ;;  %808 = vmatpush1.msra.mxu0 %v2316_v53  ;;  %v286_v61 = vpop.f32.mrf.mxu1 }
  0xe3   :  { %809 = vmatprep.subr.mxu0 %v2320_v56  ;;  %v287_v63 = vadd.f32 %v286_v61, %v2296_v39 }
  0xe4   :  { %810 = vmatpush1.msra.mxu0 %v2323_v58  ;;  %v2003_v2 = vpop.f32.mrf.mxu1 }
  0xe5   :  { %1864 = vmatmul.mubr.msk.f32.gmra.mxu0 %vm175_vm1, %v277_v52  ;;  %811 = vmatprep.subr.mxu0 %v2334_v62  ;;  %v302_v12 = vadd.f32 %v2003_v2, %v2296_v39 }
  0xe6   :  { %v157_v54 = vpop.f32.mrf.mxu0  ;;  %498 = vmatprep.mubr.f32.mxu0 %v2181_v0  ;;  %812 = vmatpush1.msra.mxu0 %v2341_v1  ;;  %v296_v6 = vpop.f32.mrf.mxu1 }
  0xe7   :  { %v158_v57 = vadd.f32 %v157_v54, %v85_v49  ;;  %813 = vmatprep.subr.mxu0 %v2344_v3  ;;  %v297_v9 = vadd.f32 %v296_v6, %v2296_v39 }
  0xe8   :  { %v1983_v59 = vpop.f32.mrf.mxu0  ;;  %814 = vmatpush1.msra.mxu0 %v2348_v4 }
  0xe9   :  { %2054 = vtanh.f32 %v158_v57  ;;  %1861 = vmatmul.mubr.msk.f32.vlgmr.msra.gmra.mxu1 %vm175_vm1, %v158_v57  ;;  %1865 = vmatmul.mubr.msk.f32.gmra.mxu0 %vm175_vm1, %v282_v60 }
  0xea   :  { %2043 = vmatpush1.msra.mxu1 %v2229_v18  ;;  %504 = vmatprep.mubr.f32.mxu1 %v2181_v0 }
  0xeb   :  { %2040 = vmatprep.subr.mxu1 %v2240_v22  ;;  %815 = vmatprep.subr.mxu0 %v2358_v7 }
  0xec   :  { %2044 = vmatpush1.msra.mxu1 %v2244_v24  ;;  %816 = vmatpush1.msra.mxu0 %v2361_v8  ;;  %v312_v24 = vsub.s32 1, %v2290_v36 }
  0xed   :  { %2041 = vmatprep.subr.mxu1 %v2259_v29  ;;  %817 = vmatprep.subr.mxu0 %v2373_v11 }
  0xee   :  { %2045 = vmatpush1.msra.mxu1 %v2275_v31  ;;  %818 = vmatpush1.msra.mxu0 %v2382_v13  ;;  %v2435_v27 = vrot.slane %v79_v23, %v312_v24 }
  0xef   :  { %2042 = vmatprep.subr.mxu1 %v2278_v32  ;;  %851 = vmatprep.mubr.f32.mxu0 %v2181_v0 }
  0xf0   :  { %2046 = vmatpush1.msra.mxu1 %v2282_v33  ;;  %1029 = vmatprep.subr.mxu0 %v2287_v34 }
  0xf1   :  { %1866 = vmatmul.mubr.msk.f32.vlgmr.msra.gmra.mxu1 %vm175_vm1, %v287_v63  ;;  %570 = vmatprep.subr.mxu1 %v2287_v34 }
  0xf2   :  { %510 = vmatprep.mubr.f32.mxu1 %v2181_v0  ;;  %571 = vmatpush1.msra.mxu1 %v2301_v46 }
  0xf3   :  { %572 = vmatprep.subr.mxu1 %v2304_v48 }
  0xf4   :  { %573 = vmatpush1.msra.mxu1 %v2308_v50 }
  0xf5   :  { %1867 = vmatmul.mubr.msk.f32.gmra.mxu1 %vm175_vm1, %v292_v5  ;;  %574 = vmatprep.subr.mxu1 %v2311_v51 }
  0xf6   :  { %v2055_v10 = vpop.eup %2054  ;;  %516 = vmatprep.mubr.f32.mxu1 %v2181_v0  ;;  %575 = vmatpush1.msra.mxu1 %v2316_v53 }
  0xf7   :  { %549 = vrot.lane.b32.xlu0 %v2055_v10, %s2183_s0  ;;  %576 = vmatprep.subr.mxu1 %v2320_v56 }
  0xf8   :  { %577 = vmatpush1.msra.mxu1 %v2323_v58 }
  0xf9   :  { %1868 = vmatmul.mubr.msk.f32.gmra.mxu1 %vm175_vm1, %v297_v9  ;;  %578 = vmatprep.subr.mxu1 %v2334_v62 }
  0xfa   :  { %522 = vmatprep.mubr.f32.mxu1 %v2181_v0  ;;  %579 = vmatpush1.msra.mxu1 %v2341_v1 }
  0xfb   :  { %580 = vmatprep.subr.mxu1 %v2344_v3 }
  0xfc   :  { %581 = vmatpush1.msra.mxu1 %v2348_v4 }
  0xfd   :  { %1869 = vmatmul.mubr.msk.f32.gmra.mxu1 %vm175_vm1, %v302_v12  ;;  %582 = vmatprep.subr.mxu1 %v2358_v7 }
  0xfe   :  { %583 = vmatpush1.msra.mxu1 %v2361_v8  ;;  %618 = vmatprep.mubr.f32.mxu1 %v2181_v0 }
  0xff   :  { %584 = vmatprep.subr.mxu1 %v2373_v11 }
 0x100   :  { %585 = vmatpush1.msra.mxu1 %v2382_v13 }
 0x101   :  { %686 = vmatprep.subr.mxu1 %v2287_v34 }
 0x169   :  { %v2396_v14 = vpop.permute.xlu0 %549 }
 0x16a   :  { %1870 = vmatmul.mubr.msk.f32.vlgmr.msra.gmra.mxu1 %vm551_vm3, %v2396_v14 }
 0x16b   :  { %687 = vmatpush1.msra.mxu1 %v2301_v46  ;;  %734 = vmatprep.mubr.f32.mxu1 %v2181_v0 }
 0x16c   :  { %688 = vmatprep.subr.mxu1 %v2304_v48 }
 0x16d   :  { %689 = vmatpush1.msra.mxu1 %v2308_v50 }
 0x16e   :  { %690 = vmatprep.subr.mxu1 %v2311_v51 }
 0x16f   :  { %691 = vmatpush1.msra.mxu1 %v2316_v53 }
 0x170   :  { %692 = vmatprep.subr.mxu1 %v2320_v56 }
 0x171   :  { %693 = vmatpush1.msra.mxu1 %v2323_v58 }
 0x172   :  { %694 = vmatprep.subr.mxu1 %v2334_v62 }
 0x173   :  { %695 = vmatpush1.msra.mxu1 %v2341_v1 }
 0x174   :  { %696 = vmatprep.subr.mxu1 %v2344_v3 }
 0x175   :  { %697 = vmatpush1.msra.mxu1 %v2348_v4 }
 0x176   :  { %698 = vmatprep.subr.mxu1 %v2358_v7 }
 0x177   :  { %699 = vmatpush1.msra.mxu1 %v2361_v8 }
 0x178   :  { %700 = vmatprep.subr.mxu1 %v2373_v11 }
 0x179   :  { %701 = vmatpush1.msra.mxu1 %v2382_v13 }
 0x17a   :  { %916 = vmatprep.subr.mxu1 %v2287_v34 }
 0x19d   :  { %v482_v6 = vpop.f32.mrf.mxu0 }
 0x19e   :  { %v483_v9 = vadd.f32 %v482_v6, %v2433_v26 }
 0x19f   :  { %v484_v10 = vpop.f32.mrf.mxu0 }
 0x1a9   :  { %v385_v15 = vpop.f32.mrf.mxu1 }
 0x1aa   :  { %v386_v29 = vadd.f32 %v385_v15, %v2433_v26 }
 0x1ab   :  { %v387_v16 = vpop.f32.mrf.mxu1 }
 0x1ac   :  { %v388_v31 = vadd.f32 %v387_v16, %v2435_v27 }
 0x1b1   :  { %v2417_v17 = vpop.f32.mrf.mxu1 }
 0x1b3   :  { %v2419_v18 = vpop.f32.mrf.mxu1 }
 0x1b5   :  { %v2421_v19 = vpop.f32.mrf.mxu1 }
 0x1b7   :  { %v2423_v20 = vpop.f32.mrf.mxu1 }
 0x1b9   :  { %v2425_v21 = vpop.f32.mrf.mxu1 }
 0x1bb   :  { %v2427_v22 = vpop.f32.mrf.mxu1 }
 0x1bd   :  { %v2430_v25 = vpop.f32.mrf.mxu1 }
 0x1bf   :  { %v2437_v28 = vpop.f32.mrf.mxu1 }
 0x22a   :  { %v620_v30 = vpop.f32.mrf.mxu1 }
 0x22b   :  { %v625_v32 = vadd.f32 %v620_v30, %v386_v29 }
 0x22c   :  { %v622_v33 = vpop.f32.mrf.mxu1 }
 0x22d   :  { %v626_v35 = vadd.f32 %v622_v33, %v388_v31  ;;  %v1871_v43 = vmul.f32 -1.442695, %v625_v32 }
 0x22f   :  { %v1872_v37 = vmul.f32 -1.442695, %v626_v35 }
 0x231   :  { %2056 = vpow2.f32 %v1872_v37 }
 0x23e   :  { %v2057_v36 = vpop.eup %2056 }
 0x23f   :  { %v634_v39 = vadd.f32 1.0, %v2057_v36 }
 0x241   :  { %2058 = vrcp.f32 %v634_v39 }
 0x242   :  { %2060 = vpow2.f32 %v1871_v43 }
 0x24e   :  { %v2059_v40 = vpop.eup %2058 }
 0x24f   :  { %v639_v41 = vmul.f32 2.0, %v2059_v40  ;;  %v2061_v44 = vpop.eup %2060 }
 0x250   :  { %v633_v45 = vadd.f32 1.0, %v2061_v44 }
 0x251   :  { %v1873_v42 = vadd.f32 -1.0, %v639_v41 }
 0x252   :  { %2062 = vrcp.f32 %v633_v45 }
 0x253   :  { %643 = vrot.lane.b32.xlu0 %v1873_v42, %s2184_s1 }
 0x25f   :  { %v2063_v47 = vpop.eup %2062 }
 0x260   :  { %v641_v54 = vmul.f32 0.0, %v2063_v47 }
 0x2c5   :  { %v644_v49 = vpop.permute.xlu0 %643 }
 0x2c6   :  { %v646_v52 = vmul.f32 %v2063_v47, %v644_v49 }
 0x2c8   :  { %648 = vrot.lane.b32.xlu1 %v646_v52, %s2184_s1 }
 0x33a   :  { %v649_v55 = vpop.permute.xlu1 %648 }
 0x33b   :  { %v651_v57 = vadd.f32 %v649_v55, %v641_v54  ;;  %v488_v54 = vpop.f32.mrf.mxu0 }
 0x33d   :  { %2064 = vtanh.f32 %v651_v57  ;;  %659 = vrot.lane.b32.xlu0 %v651_v57, %s2184_s1  ;;  %v490_v55 = vpop.f32.mrf.mxu0 }
 0x33f   :  { %v494_v57 = vpop.f32.mrf.mxu0 }
 0x34a   :  { %v2065_v59 = vpop.eup %2064 }
 0x34b   :  { %654 = vrot.lane.b32.xlu1 %v2065_v59, %s2184_s1  ;;  %v496_v59 = vpop.f32.mrf.mxu0 }
 0x3af   :  { %v660_v60 = vpop.permute.xlu0 %659 }
 0x3b0   :  { %v662_v61 = vsel %vm175_vm1, %v660_v60, 0.0  ;;  %v2493_v60 = vpop.f32.mrf.mxu0 }
 0x3b1   :  { %758 = vrot.lane.b32.xlu0 %v662_v61, %s2184_s1 }
 0x3b2   :  { %v2495_v61 = vpop.f32.mrf.mxu0 }
 0x3bd   :  { %v655_v63 = vpop.permute.xlu1 %654 }
 0x3be   :  { %v657_v2 = vmul.f32 %v2059_v40, %v655_v63  ;;  %v489_v63 = vadd.f32 %v488_v54, %v2433_v26 }
 0x3c0   :  { %v664_v5 = vsel %vm175_vm1, %v657_v2, %v2396_v14  ;;  %v485_v14 = vadd.f32 %v484_v10, %v2435_v27 }
 0x3c1   :  { %1874 = vmatmul.mubr.msk.f32.vlgmr.msra.gmra.mxu1 %vm551_vm3, %v664_v5  ;;  %v491_v5 = vadd.f32 %v490_v55, %v2435_v27 }
 0x3c2   :  { %917 = vmatpush1.msra.mxu1 %v2301_v46  ;;  %964 = vmatprep.mubr.f32.mxu1 %v2181_v0 }
 0x3c3   :  { %918 = vmatprep.subr.mxu1 %v2304_v48 }
 0x3c4   :  { %919 = vmatpush1.msra.mxu1 %v2308_v50 }
 0x3c5   :  { %920 = vmatprep.subr.mxu1 %v2311_v51 }
 0x3c6   :  { %921 = vmatpush1.msra.mxu1 %v2316_v53 }
 0x3c7   :  { %922 = vmatprep.subr.mxu1 %v2320_v56 }
 0x3c8   :  { %923 = vmatpush1.msra.mxu1 %v2323_v58 }
 0x3c9   :  { %924 = vmatprep.subr.mxu1 %v2334_v62 }
 0x3ca   :  { %925 = vmatpush1.msra.mxu1 %v2341_v1 }
 0x3cb   :  { %926 = vmatprep.subr.mxu1 %v2344_v3 }
 0x3cc   :  { %927 = vmatpush1.msra.mxu1 %v2348_v4 }
 0x3cd   :  { %928 = vmatprep.subr.mxu1 %v2358_v7 }
 0x3ce   :  { %929 = vmatpush1.msra.mxu1 %v2361_v8 }
 0x3cf   :  { %930 = vmatprep.subr.mxu1 %v2373_v11 }
 0x3d0   :  { %931 = vmatpush1.msra.mxu1 %v2382_v13 }
 0x3d1   :  { %1142 = vmatprep.subr.mxu1 %v2287_v34 }
 0x423   :  { %v759_v42 = vpop.permute.xlu0 %758 }
 0x481   :  { %v736_v12 = vpop.f32.mrf.mxu1 }
 0x482   :  { %v741_v15 = vadd.f32 %v736_v12, %v483_v9 }
 0x483   :  { %v738_v16 = vpop.f32.mrf.mxu1 }
 0x484   :  { %v742_v23 = vadd.f32 %v738_v16, %v485_v14  ;;  %v1875_v35 = vmul.f32 -1.442695, %v741_v15 }
 0x486   :  { %v1876_v24 = vmul.f32 -1.442695, %v742_v23 }
 0x488   :  { %2066 = vpow2.f32 %v1876_v24 }
 0x495   :  { %v2067_v29 = vpop.eup %2066 }
 0x496   :  { %v750_v30 = vadd.f32 1.0, %v2067_v29 }
 0x498   :  { %2068 = vrcp.f32 %v750_v30 }
 0x499   :  { %2070 = vpow2.f32 %v1875_v35 }
 0x4a5   :  { %v2069_v31 = vpop.eup %2068 }
 0x4a6   :  { %v755_v32 = vmul.f32 2.0, %v2069_v31  ;;  %v2071_v37 = vpop.eup %2070 }
 0x4a7   :  { %v749_v36 = vadd.f32 1.0, %v2071_v37 }
 0x4a8   :  { %v1877_v33 = vadd.f32 -1.0, %v755_v32 }
 0x4a9   :  { %2072 = vrcp.f32 %v749_v36 }
 0x4aa   :  { %763 = vrot.lane.b32.xlu1 %v1877_v33, %s2184_s1 }
 0x4b6   :  { %v2073_v39 = vpop.eup %2072 }
 0x4b7   :  { %v761_v43 = vmul.f32 %v2073_v39, %v759_v42 }
 0x51c   :  { %v764_v40 = vpop.permute.xlu1 %763 }
 0x51d   :  { %v766_v41 = vmul.f32 %v2073_v39, %v764_v40 }
 0x51f   :  { %768 = vrot.lane.b32.xlu1 %v766_v41, %s2184_s1 }
 0x591   :  { %v769_v44 = vpop.permute.xlu1 %768 }
 0x592   :  { %v771_v45 = vadd.f32 %v769_v44, %v761_v43  ;;  %v495_v43 = vadd.f32 %v494_v57, %v2433_v26 }
 0x594   :  { %2074 = vtanh.f32 %v771_v45 }
 0x5a1   :  { %v2075_v47 = vpop.eup %2074 }
 0x5a2   :  { %774 = vrot.lane.b32.xlu0 %v2075_v47, %s2184_s1 }
 0x614   :  { %v775_v49 = vpop.permute.xlu0 %774 }
 0x615   :  { %v2472_v52 = vmul.f32 %v2069_v31, %v775_v49 }
 0x617   :  { %1878 = vmatmul.mubr.msk.f32.vlgmr.msra.gmra.mxu0 %vm551_vm3, %v2472_v52 }
 0x618   :  { %1030 = vmatpush1.msra.mxu0 %v2301_v46  ;;  %1077 = vmatprep.mubr.f32.mxu0 %v2181_v0 }
 0x619   :  { %1031 = vmatprep.subr.mxu0 %v2304_v48 }
 0x61a   :  { %1032 = vmatpush1.msra.mxu0 %v2308_v50 }
 0x61b   :  { %1033 = vmatprep.subr.mxu0 %v2311_v51 }
 0x61c   :  { %1034 = vmatpush1.msra.mxu0 %v2316_v53 }
 0x61d   :  { %1035 = vmatprep.subr.mxu0 %v2320_v56 }
 0x61e   :  { %1036 = vmatpush1.msra.mxu0 %v2323_v58 }
 0x61f   :  { %1037 = vmatprep.subr.mxu0 %v2334_v62 }
 0x620   :  { %1038 = vmatpush1.msra.mxu0 %v2341_v1 }
 0x621   :  { %1039 = vmatprep.subr.mxu0 %v2344_v3 }
 0x622   :  { %1040 = vmatpush1.msra.mxu0 %v2348_v4 }
 0x623   :  { %1041 = vmatprep.subr.mxu0 %v2358_v7 }
 0x624   :  { %1042 = vmatpush1.msra.mxu0 %v2361_v8 }
 0x625   :  { %1043 = vmatprep.subr.mxu0 %v2373_v11 }
 0x626   :  { %1044 = vmatpush1.msra.mxu0 %v2382_v13 }
 0x627   :  { %1255 = vmatprep.subr.mxu0 %v2287_v34 }
 0x6d7   :  { %v853_v2 = vpop.f32.mrf.mxu0 }
 0x6d8   :  { %v858_v6 = vadd.f32 %v853_v2, %v489_v63 }
 0x6d9   :  { %v855_v9 = vpop.f32.mrf.mxu0 }
 0x6da   :  { %v859_v10 = vadd.f32 %v855_v9, %v491_v5  ;;  %v1879_v29 = vmul.f32 -1.442695, %v858_v6 }
 0x6dc   :  { %v1880_v12 = vmul.f32 -1.442695, %v859_v10 }
 0x6de   :  { %2076 = vpow2.f32 %v1880_v12 }
 0x6eb   :  { %v2077_v14 = vpop.eup %2076 }
 0x6ec   :  { %v867_v15 = vadd.f32 1.0, %v2077_v14 }
 0x6ee   :  { %2078 = vrcp.f32 %v867_v15 }
 0x6ef   :  { %2080 = vpow2.f32 %v1879_v29 }
 0x6fb   :  { %v2079_v16 = vpop.eup %2078 }
 0x6fc   :  { %v872_v23 = vmul.f32 2.0, %v2079_v16  ;;  %v2081_v30 = vpop.eup %2080 }
 0x6fd   :  { %v866_v31 = vadd.f32 1.0, %v2081_v30 }
 0x6fe   :  { %v1881_v24 = vadd.f32 -1.0, %v872_v23 }
 0x6ff   :  { %2082 = vrcp.f32 %v866_v31 }
 0x700   :  { %876 = vrot.lane.b32.xlu1 %v1881_v24, %s2184_s1 }
 0x70c   :  { %v2083_v32 = vpop.eup %2082 }
 0x70d   :  { %v874_v37 = vmul.f32 %v2083_v32, %v771_v45  ;;  %v497_v45 = vadd.f32 %v496_v59, %v2435_v27 }
 0x772   :  { %v877_v33 = vpop.permute.xlu1 %876 }
 0x773   :  { %v879_v35 = vmul.f32 %v2083_v32, %v877_v33  ;;  %v501_v32 = vadd.f32 %v2493_v60, %v2433_v26 }
 0x775   :  { %881 = vrot.lane.b32.xlu0 %v879_v35, %s2184_s1  ;;  %v503_v35 = vadd.f32 %v2495_v61, %v2435_v27 }
 0x7e7   :  { %v882_v36 = vpop.permute.xlu0 %881 }
 0x7e8   :  { %v884_v39 = vadd.f32 %v882_v36, %v874_v37 }
 0x7ea   :  { %2084 = vtanh.f32 %v884_v39 }
 0x7f7   :  { %v2085_v40 = vpop.eup %2084 }
 0x7f8   :  { %887 = vrot.lane.b32.xlu1 %v2085_v40, %s2184_s1 }
 0x86a   :  { %v888_v41 = vpop.permute.xlu1 %887 }
 0x86b   :  { %v2502_v42 = vmul.f32 %v2079_v16, %v888_v41 }
 0x86d   :  { %1882 = vmatmul.mubr.msk.f32.vlgmr.msra.gmra.mxu1 %vm551_vm3, %v2502_v42 }
 0x86e   :  { %1143 = vmatpush1.msra.mxu1 %v2301_v46  ;;  %1190 = vmatprep.mubr.f32.mxu1 %v2181_v0 }
 0x86f   :  { %1144 = vmatprep.subr.mxu1 %v2304_v48 }
 0x870   :  { %1145 = vmatpush1.msra.mxu1 %v2308_v50 }
 0x871   :  { %1146 = vmatprep.subr.mxu1 %v2311_v51 }
 0x872   :  { %1147 = vmatpush1.msra.mxu1 %v2316_v53 }
 0x873   :  { %1148 = vmatprep.subr.mxu1 %v2320_v56 }
 0x874   :  { %1149 = vmatpush1.msra.mxu1 %v2323_v58 }
 0x875   :  { %1150 = vmatprep.subr.mxu1 %v2334_v62 }
 0x876   :  { %1151 = vmatpush1.msra.mxu1 %v2341_v1 }
 0x877   :  { %1152 = vmatprep.subr.mxu1 %v2344_v3 }
 0x878   :  { %1153 = vmatpush1.msra.mxu1 %v2348_v4 }
 0x879   :  { %1154 = vmatprep.subr.mxu1 %v2358_v7 }
 0x87a   :  { %1155 = vmatpush1.msra.mxu1 %v2361_v8 }
 0x87b   :  { %1156 = vmatprep.subr.mxu1 %v2373_v11 }
 0x87c   :  { %1157 = vmatpush1.msra.mxu1 %v2382_v13 }
 0x87d   :  { %1368 = vmatprep.subr.mxu1 %v2287_v34 }
 0x92d   :  { %v966_v44 = vpop.f32.mrf.mxu1 }
 0x92e   :  { %v971_v47 = vadd.f32 %v966_v44, %v495_v43 }
 0x92f   :  { %v968_v49 = vpop.f32.mrf.mxu1 }
 0x930   :  { %v972_v54 = vadd.f32 %v968_v49, %v497_v45  ;;  %v1883_v10 = vmul.f32 -1.442695, %v971_v47 }
 0x932   :  { %v1884_v55 = vmul.f32 -1.442695, %v972_v54 }
 0x934   :  { %2086 = vpow2.f32 %v1884_v55 }
 0x941   :  { %v2087_v63 = vpop.eup %2086 }
 0x942   :  { %v980_v2 = vadd.f32 1.0, %v2087_v63 }
 0x944   :  { %2088 = vrcp.f32 %v980_v2 }
 0x945   :  { %2090 = vpow2.f32 %v1883_v10 }
 0x951   :  { %v2089_v5 = vpop.eup %2088 }
 0x952   :  { %v985_v6 = vmul.f32 2.0, %v2089_v5  ;;  %v2091_v12 = vpop.eup %2090 }
 0x953   :  { %v979_v57 = vadd.f32 1.0, %v2091_v12 }
 0x954   :  { %v1885_v9 = vadd.f32 -1.0, %v985_v6 }
 0x955   :  { %2092 = vrcp.f32 %v979_v57  ;;  %v507_v57 = vadd.f32 %v2417_v17, %v2433_v26 }
 0x956   :  { %989 = vrot.lane.b32.xlu0 %v1885_v9, %s2184_s1 }
 0x962   :  { %v2093_v14 = vpop.eup %2092 }
 0x963   :  { %v987_v16 = vmul.f32 %v2093_v14, %v884_v39 }
 0x9c8   :  { %v990_v59 = vpop.permute.xlu0 %989 }
 0x9c9   :  { %v992_v15 = vmul.f32 %v2093_v14, %v990_v59  ;;  %v509_v59 = vadd.f32 %v2419_v18, %v2435_v27 }
 0x9cb   :  { %994 = vrot.lane.b32.xlu1 %v992_v15, %s2184_s1 }
 0xa3d   :  { %v995_v23 = vpop.permute.xlu1 %994 }
 0xa3e   :  { %v997_v24 = vadd.f32 %v995_v23, %v987_v16 }
 0xa40   :  { %2094 = vtanh.f32 %v997_v24 }
 0xa4d   :  { %v2095_v29 = vpop.eup %2094 }
 0xa4e   :  { %1000 = vrot.lane.b32.xlu0 %v2095_v29, %s2184_s1 }
 0xac0   :  { %v1001_v30 = vpop.permute.xlu0 %1000 }
 0xac1   :  { %v2528_v31 = vmul.f32 %v2089_v5, %v1001_v30 }
 0xac3   :  { %1886 = vmatmul.mubr.msk.f32.vlgmr.msra.gmra.mxu0 %vm551_vm3, %v2528_v31 }
 0xac4   :  { %1256 = vmatpush1.msra.mxu0 %v2301_v46  ;;  %1303 = vmatprep.mubr.f32.mxu0 %v2181_v0 }
 0xac5   :  { %1257 = vmatprep.subr.mxu0 %v2304_v48 }
 0xac6   :  { %1258 = vmatpush1.msra.mxu0 %v2308_v50 }
 0xac7   :  { %1259 = vmatprep.subr.mxu0 %v2311_v51 }
 0xac8   :  { %1260 = vmatpush1.msra.mxu0 %v2316_v53 }
 0xac9   :  { %1261 = vmatprep.subr.mxu0 %v2320_v56 }
 0xaca   :  { %1262 = vmatpush1.msra.mxu0 %v2323_v58 }
 0xacb   :  { %1263 = vmatprep.subr.mxu0 %v2334_v62 }
 0xacc   :  { %1264 = vmatpush1.msra.mxu0 %v2341_v1 }
 0xacd   :  { %1265 = vmatprep.subr.mxu0 %v2344_v3 }
 0xace   :  { %1266 = vmatpush1.msra.mxu0 %v2348_v4 }
 0xacf   :  { %1267 = vmatprep.subr.mxu0 %v2358_v7 }
 0xad0   :  { %1268 = vmatpush1.msra.mxu0 %v2361_v8 }
 0xad1   :  { %1269 = vmatprep.subr.mxu0 %v2373_v11 }
 0xad2   :  { %1270 = vmatpush1.msra.mxu0 %v2382_v13 }
 0xad3   :  { %1481 = vmatprep.subr.mxu0 %v2287_v34 }
 0xb83   :  { %v1079_v33 = vpop.f32.mrf.mxu0 }
 0xb84   :  { %v1084_v37 = vadd.f32 %v1079_v33, %v501_v32 }
 0xb85   :  { %v1081_v36 = vpop.f32.mrf.mxu0 }
 0xb86   :  { %v1085_v39 = vadd.f32 %v1081_v36, %v503_v35  ;;  %v1887_v49 = vmul.f32 -1.442695, %v1084_v37 }
 0xb88   :  { %v1888_v40 = vmul.f32 -1.442695, %v1085_v39 }
 0xb8a   :  { %2096 = vpow2.f32 %v1888_v40 }
 0xb97   :  { %v2097_v41 = vpop.eup %2096 }
 0xb98   :  { %v1093_v43 = vadd.f32 1.0, %v2097_v41 }
 0xb9a   :  { %2098 = vrcp.f32 %v1093_v43 }
 0xb9b   :  { %2100 = vpow2.f32 %v1887_v49  ;;  %v513_v49 = vadd.f32 %v2421_v19, %v2433_v26 }
 0xba7   :  { %v2099_v44 = vpop.eup %2098 }
 0xba8   :  { %v1098_v45 = vmul.f32 2.0, %v2099_v44  ;;  %v2101_v60 = vpop.eup %2100 }
 0xba9   :  { %v1092_v54 = vadd.f32 1.0, %v2101_v60 }
 0xbaa   :  { %v1889_v47 = vadd.f32 -1.0, %v1098_v45 }
 0xbab   :  { %2102 = vrcp.f32 %v1092_v54  ;;  %v515_v54 = vadd.f32 %v2423_v20, %v2435_v27 }
 0xbac   :  { %1102 = vrot.lane.b32.xlu1 %v1889_v47, %s2184_s1 }
 0xbb8   :  { %v2103_v55 = vpop.eup %2102 }
 0xbb9   :  { %v1100_v2 = vmul.f32 %v2103_v55, %v997_v24 }
 0xc1e   :  { %v1103_v61 = vpop.permute.xlu1 %1102 }
 0xc1f   :  { %v1105_v63 = vmul.f32 %v2103_v55, %v1103_v61 }
 0xc21   :  { %1107 = vrot.lane.b32.xlu0 %v1105_v63, %s2184_s1 }
 0xc93   :  { %v1108_v5 = vpop.permute.xlu0 %1107 }
 0xc94   :  { %v1110_v6 = vadd.f32 %v1108_v5, %v1100_v2 }
 0xc96   :  { %2104 = vtanh.f32 %v1110_v6 }
 0xca3   :  { %v2105_v9 = vpop.eup %2104 }
 0xca4   :  { %1113 = vrot.lane.b32.xlu1 %v2105_v9, %s2184_s1 }
 0xd16   :  { %v1114_v10 = vpop.permute.xlu1 %1113 }
 0xd17   :  { %v2556_v12 = vmul.f32 %v2099_v44, %v1114_v10 }
 0xd19   :  { %1890 = vmatmul.mubr.msk.f32.vlgmr.msra.gmra.mxu1 %vm551_vm3, %v2556_v12 }
 0xd1a   :  { %1369 = vmatpush1.msra.mxu1 %v2301_v46  ;;  %1416 = vmatprep.mubr.f32.mxu1 %v2181_v0 }
 0xd1b   :  { %1370 = vmatprep.subr.mxu1 %v2304_v48 }
 0xd1c   :  { %1371 = vmatpush1.msra.mxu1 %v2308_v50 }
 0xd1d   :  { %1372 = vmatprep.subr.mxu1 %v2311_v51 }
 0xd1e   :  { %1373 = vmatpush1.msra.mxu1 %v2316_v53 }
 0xd1f   :  { %1374 = vmatprep.subr.mxu1 %v2320_v56 }
 0xd20   :  { %1375 = vmatpush1.msra.mxu1 %v2323_v58 }
 0xd21   :  { %1376 = vmatprep.subr.mxu1 %v2334_v62 }
 0xd22   :  { %1377 = vmatpush1.msra.mxu1 %v2341_v1 }
 0xd23   :  { %1378 = vmatprep.subr.mxu1 %v2344_v3 }
 0xd24   :  { %1379 = vmatpush1.msra.mxu1 %v2348_v4 }
 0xd25   :  { %1380 = vmatprep.subr.mxu1 %v2358_v7 }
 0xd26   :  { %1381 = vmatpush1.msra.mxu1 %v2361_v8 }
 0xd27   :  { %1382 = vmatprep.subr.mxu1 %v2373_v11 }
 0xd28   :  { %1383 = vmatpush1.msra.mxu1 %v2382_v13 }
 0xd29   :  { %1592 = vmatprep.subr.mxu1 %v2287_v34 }
 0xdd9   :  { %v1192_v14 = vpop.f32.mrf.mxu1 }
 0xdda   :  { %v1197_v15 = vadd.f32 %v1192_v14, %v507_v57 }
 0xddb   :  { %v1194_v16 = vpop.f32.mrf.mxu1 }
 0xddc   :  { %v1198_v23 = vadd.f32 %v1194_v16, %v509_v59  ;;  %v1891_v34 = vmul.f32 -1.442695, %v1197_v15 }
 0xdde   :  { %v1892_v24 = vmul.f32 -1.442695, %v1198_v23 }
 0xde0   :  { %2106 = vpow2.f32 %v1892_v24 }
 0xded   :  { %v2107_v29 = vpop.eup %2106 }
 0xdee   :  { %v1206_v30 = vadd.f32 1.0, %v2107_v29 }
 0xdf0   :  { %2108 = vrcp.f32 %v1206_v30 }
 0xdf1   :  { %2110 = vpow2.f32 %v1891_v34 }
 0xdfd   :  { %v2109_v32 = vpop.eup %2108 }
 0xdfe   :  { %v1211_v33 = vmul.f32 2.0, %v2109_v32  ;;  %v2111_v17 = vpop.eup %2110 }
 0xdff   :  { %v1205_v37 = vadd.f32 1.0, %v2111_v17 }
 0xe00   :  { %v1893_v35 = vadd.f32 -1.0, %v1211_v33 }
 0xe01   :  { %2112 = vrcp.f32 %v1205_v37 }
 0xe02   :  { %1215 = vrot.lane.b32.xlu0 %v1893_v35, %s2184_s1 }
 0xe0e   :  { %v2113_v36 = vpop.eup %2112 }
 0xe0f   :  { %v1213_v40 = vmul.f32 %v2113_v36, %v1110_v6 }
 0xe74   :  { %v1216_v18 = vpop.permute.xlu0 %1215 }
 0xe75   :  { %v1218_v39 = vmul.f32 %v2113_v36, %v1216_v18 }
 0xe77   :  { %1220 = vrot.lane.b32.xlu1 %v1218_v39, %s2184_s1 }
 0xee9   :  { %v1221_v41 = vpop.permute.xlu1 %1220 }
 0xeea   :  { %v1223_v43 = vadd.f32 %v1221_v41, %v1213_v40  ;;  %v525_v40 = vadd.f32 %v2430_v25, %v2433_v26 }
 0xeec   :  { %2114 = vtanh.f32 %v1223_v43 }
 0xef9   :  { %v2115_v44 = vpop.eup %2114 }
 0xefa   :  { %1226 = vrot.lane.b32.xlu0 %v2115_v44, %s2184_s1 }
 0xf6c   :  { %v1227_v45 = vpop.permute.xlu0 %1226 }
 0xf6d   :  { %v2584_v47 = vmul.f32 %v2109_v32, %v1227_v45 }
 0xf6f   :  { %1894 = vmatmul.mubr.msk.f32.vlgmr.msra.gmra.mxu0 %vm551_vm3, %v2584_v47 }
 0xf70   :  { %1482 = vmatpush1.msra.mxu0 %v2301_v46  ;;  %1529 = vmatprep.mubr.f32.mxu0 %v2181_v0 }
 0xf71   :  { %1483 = vmatprep.subr.mxu0 %v2304_v48 }
 0xf72   :  { %1484 = vmatpush1.msra.mxu0 %v2308_v50 }
 0xf73   :  { %1485 = vmatprep.subr.mxu0 %v2311_v51 }
 0xf74   :  { %1486 = vmatpush1.msra.mxu0 %v2316_v53 }
 0xf75   :  { %1487 = vmatprep.subr.mxu0 %v2320_v56 }
 0xf76   :  { %1488 = vmatpush1.msra.mxu0 %v2323_v58 }
 0xf77   :  { %1489 = vmatprep.subr.mxu0 %v2334_v62 }
 0xf78   :  { %1490 = vmatpush1.msra.mxu0 %v2341_v1 }
 0xf79   :  { %1491 = vmatprep.subr.mxu0 %v2344_v3 }
 0xf7a   :  { %1492 = vmatpush1.msra.mxu0 %v2348_v4 }
 0xf7b   :  { %1493 = vmatprep.subr.mxu0 %v2358_v7 }
 0xf7c   :  { %1494 = vmatpush1.msra.mxu0 %v2361_v8 }
 0xf7d   :  { %1495 = vmatprep.subr.mxu0 %v2373_v11 }
 0xf7e   :  { %1496 = vmatpush1.msra.mxu0 %v2382_v13 }
 0xf7f   :  { %2004 = vmatprep.subr.mxu0 %v2181_v0 }
0x102f   :  { %v1305_v60 = vpop.f32.mrf.mxu0 }
0x1030   :  { %v1310_v55 = vadd.f32 %v1305_v60, %v513_v49 }
0x1031   :  { %v1307_v61 = vpop.f32.mrf.mxu0 }
0x1032   :  { %v1311_v63 = vadd.f32 %v1307_v61, %v515_v54  ;;  %v1895_v14 = vmul.f32 -1.442695, %v1310_v55 }
0x1034   :  { %v1896_v2 = vmul.f32 -1.442695, %v1311_v63 }
0x1036   :  { %2116 = vpow2.f32 %v1896_v2 }
0x1043   :  { %v2117_v5 = vpop.eup %2116 }
0x1044   :  { %v1319_v6 = vadd.f32 1.0, %v2117_v5 }
0x1046   :  { %2118 = vrcp.f32 %v1319_v6 }
0x1047   :  { %2120 = vpow2.f32 %v1895_v14 }
0x1053   :  { %v2119_v9 = vpop.eup %2118 }
0x1054   :  { %v1324_v10 = vmul.f32 2.0, %v2119_v9  ;;  %v2121_v19 = vpop.eup %2120 }
0x1055   :  { %v1318_v59 = vadd.f32 1.0, %v2121_v19 }
0x1056   :  { %v1897_v57 = vadd.f32 -1.0, %v1324_v10 }
0x1057   :  { %2122 = vrcp.f32 %v1318_v59 }
0x1058   :  { %1328 = vrot.lane.b32.xlu1 %v1897_v57, %s2184_s1 }
0x1064   :  { %v2123_v15 = vpop.eup %2122 }
0x1065   :  { %v1326_v23 = vmul.f32 %v2123_v15, %v1223_v43  ;;  %v527_v43 = vadd.f32 %v2437_v28, %v2435_v27 }
0x10ca   :  { %v1329_v20 = vpop.permute.xlu1 %1328 }
0x10cb   :  { %v1331_v16 = vmul.f32 %v2123_v15, %v1329_v20 }
0x10cd   :  { %1333 = vrot.lane.b32.xlu0 %v1331_v16, %s2184_s1 }
0x113f   :  { %v1334_v24 = vpop.permute.xlu0 %1333 }
0x1140   :  { %v1336_v29 = vadd.f32 %v1334_v24, %v1326_v23 }
0x1142   :  { %2124 = vtanh.f32 %v1336_v29 }
0x114f   :  { %v2125_v30 = vpop.eup %2124 }
0x1150   :  { %1339 = vrot.lane.b32.xlu1 %v2125_v30, %s2184_s1 }
0x11c2   :  { %v1340_v32 = vpop.permute.xlu1 %1339 }
0x11c3   :  { %v2612_v33 = vmul.f32 %v2119_v9, %v1340_v32 }
0x11c5   :  { %1898 = vmatmul.mubr.msk.f32.vlgmr.msra.gmra.mxu1 %vm551_vm3, %v2612_v33 }
0x11c6   :  { %1593 = vmatpush1.msra.mxu1 %v2301_v46  ;;  %1640 = vmatprep.mubr.f32.mxu1 %v2181_v0  ;;  %v519_v46 = vadd.f32 %v2425_v21, %v2433_v26 }
0x11c7   :  { %1594 = vmatprep.subr.mxu1 %v2304_v48 }
0x11c8   :  { %1595 = vmatpush1.msra.mxu1 %v2308_v50  ;;  %v521_v50 = vadd.f32 %v2427_v22, %v2435_v27 }
0x11c9   :  { %1596 = vmatprep.subr.mxu1 %v2311_v51 }
0x11ca   :  { %1597 = vmatpush1.msra.mxu1 %v2316_v53 }
0x11cb   :  { %1598 = vmatprep.subr.mxu1 %v2320_v56 }
0x11cc   :  { %1599 = vmatpush1.msra.mxu1 %v2323_v58 }
0x11cd   :  { %1600 = vmatprep.subr.mxu1 %v2334_v62 }
0x11ce   :  { %1601 = vmatpush1.msra.mxu1 %v2341_v1 }
0x11cf   :  { %1602 = vmatprep.subr.mxu1 %v2344_v3 }
0x11d0   :  { %1603 = vmatpush1.msra.mxu1 %v2348_v4 }
0x11d1   :  { %1604 = vmatprep.subr.mxu1 %v2358_v7 }
0x11d2   :  { %1605 = vmatpush1.msra.mxu1 %v2361_v8 }
0x11d3   :  { %1606 = vmatprep.subr.mxu1 %v2373_v11 }
0x11d4   :  { %1607 = vmatpush1.msra.mxu1 %v2382_v13 }
0x1285   :  { %v1418_v48 = vpop.f32.mrf.mxu1 }
0x1286   :  { %v1423_v51 = vadd.f32 %v1418_v48, %v519_v46 }
0x1287   :  { %v1420_v53 = vpop.f32.mrf.mxu1 }
0x1288   :  { %v1424_v56 = vadd.f32 %v1420_v53, %v521_v50  ;;  %v1899_v8 = vmul.f32 -1.442695, %v1423_v51 }
0x128a   :  { %v1900_v58 = vmul.f32 -1.442695, %v1424_v56 }
0x128c   :  { %2126 = vpow2.f32 %v1900_v58 }
0x1299   :  { %v2127_v62 = vpop.eup %2126 }
0x129a   :  { %v1432_v1 = vadd.f32 1.0, %v2127_v62  ;;  %v51_v62 = vld [vmem:[#allocation4 + $0x150] sm:$0xff] }
0x129c   :  { %2128 = vrcp.f32 %v1432_v1  ;;  %v50_v1 = vld [vmem:[#allocation4 + $0x140] sm:$0xff] }
0x129d   :  { %2130 = vpow2.f32 %v1899_v8 }
0x12a9   :  { %v2129_v3 = vpop.eup %2128 }
0x12aa   :  { %v1437_v4 = vmul.f32 2.0, %v2129_v3  ;;  %v2131_v11 = vpop.eup %2130 }
0x12ab   :  { %v1431_v13 = vadd.f32 1.0, %v2131_v11 }
0x12ac   :  { %v1901_v7 = vadd.f32 -1.0, %v1437_v4 }
0x12ad   :  { %2132 = vrcp.f32 %v1431_v13 }
0x12ae   :  { %1441 = vrot.lane.b32.xlu0 %v1901_v7, %s2184_s1 }
0x12ba   :  { %v2133_v21 = vpop.eup %2132 }
0x12bb   :  { %v1439_v34 = vmul.f32 %v2133_v21, %v1336_v29 }
0x1320   :  { %v1442_v22 = vpop.permute.xlu0 %1441 }
0x1321   :  { %v1444_v35 = vmul.f32 %v2133_v21, %v1442_v22 }
0x1323   :  { %1446 = vrot.lane.b32.xlu1 %v1444_v35, %s2184_s1 }
0x1395   :  { %v1447_v17 = vpop.permute.xlu1 %1446 }
0x1396   :  { %v1449_v37 = vadd.f32 %v1447_v17, %v1439_v34 }
0x1398   :  { %2134 = vtanh.f32 %v1449_v37 }
0x13a5   :  { %v2135_v36 = vpop.eup %2134 }
0x13a6   :  { %1452 = vrot.lane.b32.xlu0 %v2135_v36, %s2184_s1 }
0x1418   :  { %v1453_v18 = vpop.permute.xlu0 %1452 }
0x1419   :  { %v2639_v39 = vmul.f32 %v2129_v3, %v1453_v18  ;;  %v48_v3 = vld [vmem:[#allocation4 + $0x120] sm:$0xff] }
0x141b   :  { %1902 = vmatmul.mubr.msk.f32.vlgmr.msra.gmra.mxu0 %vm551_vm3, %v2639_v39 }
0x141c   :  { %2012 = vmatprep.mubr.msk.f32.mxu0 %vm2182_vm0, %v2181_v0  ;;  %2005 = vmatpush3.msra.mxu0 %v51_v62 }
0x141d   :  { %2006 = vmatprep.subr.mxu0 %v2181_v0 }
0x141e   :  { %2007 = vmatpush3.msra.mxu0 %v50_v1 }
0x141f   :  { %2008 = vmatprep.subr.mxu0 %v2181_v0 }
0x14db   :  { %v1531_v41 = vpop.f32.mrf.mxu0 }
0x14dc   :  { %v1536_v44 = vadd.f32 %v1531_v41, %v525_v40 }
0x14dd   :  { %v1533_v45 = vpop.f32.mrf.mxu0 }
0x14de   :  { %v1537_v49 = vadd.f32 %v1533_v45, %v527_v43  ;;  %v1903_v5 = vmul.f32 -1.442695, %v1536_v44 }
0x14e0   :  { %v1904_v60 = vmul.f32 -1.442695, %v1537_v49  ;;  %v53_v49 = vld [vmem:[#allocation4 + $0x160] ss:$8 sm:$0x3] }
0x14e2   :  { %2136 = vpow2.f32 %v1904_v60  ;;  %v1699_v60 = vrot.slane %v53_v49, %v2293_v38 }
0x14ef   :  { %v2137_v54 = vpop.eup %2136 }
0x14f0   :  { %v1545_v55 = vadd.f32 1.0, %v2137_v54 }
0x14f2   :  { %2138 = vrcp.f32 %v1545_v55 }
0x14f3   :  { %2140 = vpow2.f32 %v1903_v5 }
0x14ff   :  { %v2139_v61 = vpop.eup %2138 }
0x1500   :  { %v1550_v63 = vmul.f32 2.0, %v2139_v61  ;;  %v2141_v25 = vpop.eup %2140 }
0x1501   :  { %v1544_v6 = vadd.f32 1.0, %v2141_v25 }
0x1502   :  { %v1905_v2 = vadd.f32 -1.0, %v1550_v63 }
0x1503   :  { %2142 = vrcp.f32 %v1544_v6 }
0x1504   :  { %1554 = vrot.lane.b32.xlu1 %v1905_v2, %s2184_s1 }
0x1510   :  { %v2143_v9 = vpop.eup %2142 }
0x1511   :  { %v1552_v57 = vmul.f32 %v2143_v9, %v1449_v37 }
0x1576   :  { %v1555_v28 = vpop.permute.xlu1 %1554 }
0x1577   :  { %v1557_v10 = vmul.f32 %v2143_v9, %v1555_v28 }
0x1579   :  { %1559 = vrot.lane.b32.xlu0 %v1557_v10, %s2184_s1 }
0x15eb   :  { %v1560_v14 = vpop.permute.xlu0 %1559 }
0x15ec   :  { %v1562_v19 = vadd.f32 %v1560_v14, %v1552_v57 }
0x15ee   :  { %2144 = vtanh.f32 %v1562_v19 }
0x15fb   :  { %v2145_v59 = vpop.eup %2144 }
0x15fc   :  { %1565 = vrot.lane.b32.xlu1 %v2145_v59, %s2184_s1 }
0x166e   :  { %v1566_v15 = vpop.permute.xlu1 %1565 }
0x166f   :  { %v2652_v20 = vmul.f32 %v2139_v61, %v1566_v15 }
0x1671   :  { %1906 = vmatmul.mubr.msk.f32.vlgmr.msra.gmra.mxu1 %vm551_vm3, %v2652_v20 }
0x1731   :  { %v1642_v16 = vpop.f32.mrf.mxu1 }
0x1732   :  { %v1647_v51 = vadd.f32 %v1642_v16, %v2433_v26 }
0x1733   :  { %v1644_v23 = vpop.f32.mrf.mxu1 }
0x1734   :  { %v1648_v24 = vadd.f32 %v1644_v23, %v2435_v27  ;;  %v1907_v53 = vmul.f32 -1.442695, %v1647_v51  ;;  %v49_v27 = vld [vmem:[#allocation4 + $0x130] sm:$0xff] }
0x1735   :  { %2009 = vmatpush3.msra.mxu0 %v49_v27 }
0x1736   :  { %v1908_v29 = vmul.f32 -1.442695, %v1648_v24  ;;  %2010 = vmatprep.subr.mxu0 %v2181_v0 }
0x1737   :  { %2011 = vmatpush3.msra.mxu0 %v48_v3 }
0x1738   :  { %2146 = vpow2.f32 %v1908_v29 }
0x1745   :  { %v2147_v30 = vpop.eup %2146 }
0x1746   :  { %v1656_v32 = vadd.f32 1.0, %v2147_v30 }
0x1748   :  { %2148 = vrcp.f32 %v1656_v32 }
0x1749   :  { %2150 = vpow2.f32 %v1907_v53 }
0x1755   :  { %v2149_v46 = vpop.eup %2148 }
0x1756   :  { %v1661_v48 = vmul.f32 2.0, %v2149_v46  ;;  %v2151_v56 = vpop.eup %2150 }
0x1757   :  { %v1655_v58 = vadd.f32 1.0, %v2151_v56 }
0x1758   :  { %v1909_v50 = vadd.f32 -1.0, %v1661_v48 }
0x1759   :  { %2152 = vrcp.f32 %v1655_v58 }
0x175a   :  { %1665 = vrot.lane.b32.xlu0 %v1909_v50, %s2184_s1 }
0x1766   :  { %v2153_v4 = vpop.eup %2152 }
0x1767   :  { %v1663_v8 = vmul.f32 %v2153_v4, %v1562_v19 }
0x17cc   :  { %v1666_v7 = vpop.permute.xlu0 %1665 }
0x17cd   :  { %v1668_v26 = vmul.f32 %v2153_v4, %v1666_v7 }
0x17cf   :  { %1670 = vrot.lane.b32.xlu1 %v1668_v26, %s2184_s1 }
0x17d3   :  { %779 = vrot.lane.b32.xlu1 %v2472_v52, %s2183_s0 }
0x17d7   :  { %1005 = vrot.lane.b32.xlu1 %v2528_v31, %s2183_s0 }
0x17db   :  { %1231 = vrot.lane.b32.xlu1 %v2584_v47, %s2183_s0 }
0x17df   :  { %1457 = vrot.lane.b32.xlu1 %v2639_v39, %s2183_s0 }
0x1841   :  { %v1671_v11 = vpop.permute.xlu1 %1670 }
0x1842   :  { %v1673_v13 = vadd.f32 %v1671_v11, %v1663_v8 }
0x1844   :  { %2154 = vtanh.f32 %v1673_v13 }
0x1845   :  { %v780_v21 = vpop.permute.xlu1 %779 }
0x1846   :  { %782 = vst.msk [vmem:[#allocation3] sm:$0xff] %vm175_vm1, %v780_v21 }
0x1849   :  { %v1006_v22 = vpop.permute.xlu1 %1005 }
0x184a   :  { %1008 = vst.msk [vmem:[#allocation3 + $0x10] sm:$0xff] %vm175_vm1, %v1006_v22 }
0x184d   :  { %v1232_v52 = vpop.permute.xlu1 %1231  ;;  %v1686_v35 = vld [vmem:[#allocation3] sm:$0xff] }
0x184e   :  { %1234 = vst.msk [vmem:[#allocation3 + $0x20] sm:$0xff] %vm175_vm1, %v1232_v52  ;;  %2013 = vmatmul.mubr.msk.f32.vlgmr.msra.gmra.mxu0 %vm175_vm1, %v1686_v35 }
0x184f   :  { %2015 = vmatprep.mubr.msk.f32.mxu0 %vm2182_vm0, %v2181_v0 }
0x1851   :  { %v2155_v31 = vpop.eup %2154  ;;  %v1458_v47 = vpop.permute.xlu1 %1457  ;;  %v1688_v39 = vld [vmem:[#allocation3 + $0x10] sm:$0xff] }
0x1852   :  { %1460 = vst.msk [vmem:[#allocation3 + $0x30] sm:$0xff] %vm175_vm1, %v1458_v47  ;;  %1676 = vrot.lane.b32.xlu0 %v2155_v31, %s2184_s1 }
0x1855   :  { %v1690_v41 = vld [vmem:[#allocation3 + $0x20] sm:$0xff] }
0x1856   :  { %892 = vrot.lane.b32.xlu0 %v2502_v42, %s2183_s0 }
0x1859   :  { %v1692_v44 = vld [vmem:[#allocation3 + $0x30] sm:$0xff] }
0x185a   :  { %1118 = vrot.lane.b32.xlu0 %v2556_v12, %s2183_s0 }
0x185e   :  { %1344 = vrot.lane.b32.xlu0 %v2612_v33, %s2183_s0 }
0x1862   :  { %1570 = vrot.lane.b32.xlu0 %v2652_v20, %s2183_s0 }
0x18c4   :  { %v1677_v34 = vpop.permute.xlu0 %1676 }
0x18c5   :  { %v1679_v17 = vmul.f32 %v2149_v46, %v1677_v34 }
0x18c7   :  { %v1680_v37 = vsel %vm175_vm1, %v2652_v20, %v1679_v17 }
0x18c8   :  { %1682 = vrot.lane.b32.xlu1 %v1680_v37, %s2183_s0  ;;  %v893_v36 = vpop.permute.xlu0 %892 }
0x18c9   :  { %895 = vst.msk [vmem:[#allocation3 + $0x8] sm:$0xff] %vm175_vm1, %v893_v36 }
0x18cc   :  { %v1119_v42 = vpop.permute.xlu0 %1118 }
0x18cd   :  { %1121 = vst.msk [vmem:[#allocation3 + $0x18] sm:$0xff] %vm175_vm1, %v1119_v42 }
0x18d0   :  { %v1345_v12 = vpop.permute.xlu0 %1344  ;;  %v1687_v18 = vld [vmem:[#allocation3 + $0x8] sm:$0xff] }
0x18d1   :  { %1347 = vst.msk [vmem:[#allocation3 + $0x28] sm:$0xff] %vm175_vm1, %v1345_v12  ;;  %2016 = vmatmul.mubr.msk.f32.gmra.mxu0 %vm175_vm1, %v1687_v18 }
0x18d2   :  { %2018 = vmatprep.mubr.msk.f32.mxu0 %vm2182_vm0, %v2181_v0 }
0x18d4   :  { %v1571_v33 = vpop.permute.xlu0 %1570  ;;  %v1689_v40 = vld [vmem:[#allocation3 + $0x18] sm:$0xff] }
0x18d5   :  { %1573 = vst.msk [vmem:[#allocation3 + $0x38] sm:$0xff] %vm175_vm1, %v1571_v33  ;;  %2019 = vmatmul.mubr.msk.f32.gmra.mxu0 %vm175_vm1, %v1688_v39 }
0x18d6   :  { %2021 = vmatprep.mubr.msk.f32.mxu0 %vm2182_vm0, %v2181_v0 }
0x18d8   :  { %v1691_v43 = vld [vmem:[#allocation3 + $0x28] sm:$0xff] }
0x18d9   :  { %2022 = vmatmul.mubr.msk.f32.gmra.mxu0 %vm175_vm1, %v1689_v40 }
0x18da   :  { %2024 = vmatprep.mubr.msk.f32.mxu0 %vm2182_vm0, %v2181_v0 }
0x18dc   :  { %v1693_v45 = vld [vmem:[#allocation3 + $0x38] sm:$0xff] }
0x18dd   :  { %2025 = vmatmul.mubr.msk.f32.gmra.mxu0 %vm175_vm1, %v1690_v41 }
0x18de   :  { %2027 = vmatprep.mubr.msk.f32.mxu0 %vm2182_vm0, %v2181_v0 }
0x18e1   :  { %2028 = vmatmul.mubr.msk.f32.gmra.mxu0 %vm175_vm1, %v1691_v43 }
0x18e2   :  { %2030 = vmatprep.mubr.msk.f32.mxu0 %vm2182_vm0, %v2181_v0 }
0x18e5   :  { %2031 = vmatmul.mubr.msk.f32.gmra.mxu0 %vm175_vm1, %v1692_v44 }
0x18e6   :  { %2033 = vmatprep.mubr.msk.f32.mxu0 %vm2182_vm0, %v2181_v0 }
0x18e9   :  { %2034 = vmatmul.mubr.msk.f32.gmra.mxu0 %vm175_vm1, %v1693_v45 }
0x18ea   :  { %2036 = vmatprep.mubr.msk.f32.mxu0 %vm2182_vm0, %v2181_v0 }
0x190e   :  { %v1794_v54 = vpop.f32.mrf.mxu0 }
0x190f   :  { %v1795_v55 = vadd.f32 %v1794_v54, %v1699_v60 }
0x1910   :  { %v2014_v61 = vpop.f32.mrf.mxu0 }
0x1911   :  { %1838 = vst.msk [vmem:[%s2757_s3] sm:$0xff] %vm175_vm1, %v1795_v55 }
0x193a   :  { %v1683_v63 = vpop.permute.xlu1 %1682 }
0x193b   :  { %1685 = vst.msk [vmem:[#allocation3 + $0x40] sm:$0xff] %vm175_vm1, %v1683_v63 }
0x1942   :  { %v1694_v2 = vld [vmem:[#allocation3 + $0x40] sm:$0xff] }
0x1943   :  { %2037 = vmatmul.mubr.msk.f32.gmra.mxu0 %vm175_vm1, %v1694_v2 }
0x1991   :  { %v1799_v5 = vpop.f32.mrf.mxu0 }
0x1992   :  { %v1800_v25 = vadd.f32 %v1799_v5, %v1699_v60 }
0x1993   :  { %v2017_v0 = vpop.f32.mrf.mxu0 }
0x1994   :  { %1839 = vst.msk [vmem:[%s2757_s3 + $0x8] sm:$0xff] %vm175_vm1, %v1800_v25 }
0x1995   :  { %v1804_v38 = vpop.f32.mrf.mxu0 }
0x1996   :  { %v1805_v6 = vadd.f32 %v1804_v38, %v1699_v60 }
0x1997   :  { %v2020_v9 = vpop.f32.mrf.mxu0 }
0x1998   :  { %1840 = vst.msk [vmem:[%s2757_s3 + $0x10] sm:$0xff] %vm175_vm1, %v1805_v6 }
0x1999   :  { %v1809_v28 = vpop.f32.mrf.mxu0 }
0x199a   :  { %v1810_v10 = vadd.f32 %v1809_v28, %v1699_v60 }
0x199b   :  { %v2023_v57 = vpop.f32.mrf.mxu0 }
0x199c   :  { %1841 = vst.msk [vmem:[%s2757_s3 + $0x18] sm:$0xff] %vm175_vm1, %v1810_v10 }
0x199d   :  { %v1814_v14 = vpop.f32.mrf.mxu0 }
0x199e   :  { %v1815_v19 = vadd.f32 %v1814_v14, %v1699_v60 }
0x199f   :  { %v2026_v59 = vpop.f32.mrf.mxu0 }
0x19a0   :  { %1842 = vst.msk [vmem:[%s2757_s3 + $0x20] sm:$0xff] %vm175_vm1, %v1815_v19 }
0x19a1   :  { %v1819_v15 = vpop.f32.mrf.mxu0 }
0x19a2   :  { %v1820_v20 = vadd.f32 %v1819_v15, %v1699_v60 }
0x19a3   :  { %v2029_v16 = vpop.f32.mrf.mxu0 }
0x19a4   :  { %1843 = vst.msk [vmem:[%s2757_s3 + $0x28] sm:$0xff] %vm175_vm1, %v1820_v20 }
0x19a5   :  { %v1824_v23 = vpop.f32.mrf.mxu0 }
0x19a6   :  { %v1825_v24 = vadd.f32 %v1824_v23, %v1699_v60 }
0x19a7   :  { %v2032_v29 = vpop.f32.mrf.mxu0 }
0x19a8   :  { %1844 = vst.msk [vmem:[%s2757_s3 + $0x30] sm:$0xff] %vm175_vm1, %v1825_v24 }
0x19a9   :  { %v1829_v30 = vpop.f32.mrf.mxu0 }
0x19aa   :  { %v1830_v32 = vadd.f32 %v1829_v30, %v1699_v60 }
0x19ab   :  { %v2035_v46 = vpop.f32.mrf.mxu0 }
0x19ac   :  { %1845 = vst.msk [vmem:[%s2757_s3 + $0x38] sm:$0xff] %vm175_vm1, %v1830_v32 }
0x1a03   :  { %v1834_v48 = vpop.f32.mrf.mxu0 }
0x1a04   :  { %v1835_v50 = vadd.f32 %v1834_v48, %v1699_v60 }
0x1a05   :  { %v2038_v51 = vpop.f32.mrf.mxu0 }
0x1a06   :  { %1846 = vst.msk [vmem:[%s2757_s3 + $0x40] sm:$0xff] %vm175_vm1, %v1835_v50 }
0x1a07   :  { %1851 = vsyncpa [#allocation5], 1 }

</bundles_post_ra>
